<compile_context>
chip_gen: v5e
topology: v5e:2x2
jax: 0.10.0
libtpu: 0.0.40
codegen_flags: <defaults>
</compile_context>

<pallas_src>
import jax
import jax.numpy as jnp
import numpy as np
from jax import lax
from jax.experimental import pallas as pl
from jax.experimental.pallas import tpu as pltpu

# ---- module hyper-parameters (EmotionEncSALayer(emotion_features=E, c=C,
#      num_heads=H, kernel_size=K, padding='SAME', norm='ln', act='gelu')) ----
E = 8          # emotion_features
C = 32         # c (hidden size)
H = 4          # num_heads
K = 9          # ffn kernel_size
F = 4 * C      # ffn filter size (4 * c)
D_HEAD = C // H
PAD = K // 2
CE = C + E     # conv input channels ([hidden | emotion])
LN_EPS = 1e-5
NEG_INF = np.float32(-1e30)   # finite on purpose: fully-masked rows stay NaN-free


def _layer_norm(v, w, b):
    mu = jnp.mean(v, axis=-1, keepdims=True)
    vc = v - mu
    var = jnp.mean(vc * vc, axis=-1, keepdims=True)
    return vc * lax.rsqrt(var + LN_EPS) * w + b


def _gelu_tanh(v):
    # tanh-approx GELU (max abs error vs exact erf GELU < 5e-4); tanh -> EUP.
    c0 = np.float32(0.7978845608028654)   # sqrt(2/pi)
    c1 = np.float32(0.044715)
    return 0.5 * v * (1.0 + jnp.tanh(c0 * (v + c1 * v * v * v)))


def _emotion_enc_sa_kernel(
        x_ref, kbias_ref, nonpad_ref, emo_ref,
        lnp_ref, wqkv_ref, wo_ref, convw_ref, convb_ref, w2e_ref, w2h_ref,
        o_ref, pad_ref):
    f32 = jnp.float32
    Bb, T, Cc = x_ref.shape
    N = Bb * T

    x0 = x_ref[...].reshape(N, Cc)                       # (N, C)
    nonpad3 = nonpad_ref[...]                            # (Bb, T, 1)
    nonpad = nonpad3.reshape(N, 1)
    emo = emo_ref[...]                                   # (Bb, E+1)  [emotion | 1]

    # ---------------- self-attention block ----------------
    h1 = _layer_norm(x0, lnp_ref[0:1, :], lnp_ref[1:2, :])
    kb = jnp.broadcast_to(kbias_ref[...], (Bb, T, T))    # hoisted additive key mask

    attn = jnp.zeros((N, Cc), f32)
    for hd in range(H):                                  # no lane slicing / concats
        q_h = jnp.dot(h1, wqkv_ref[hd], preferred_element_type=f32)
        k_h = jnp.dot(h1, wqkv_ref[H + hd], preferred_element_type=f32)
        v_h = jnp.dot(h1, wqkv_ref[2 * H + hd], preferred_element_type=f32)
        q3 = q_h.reshape(Bb, T, D_HEAD)
        k3 = k_h.reshape(Bb, T, D_HEAD)
        v3 = v_h.reshape(Bb, T, D_HEAD)
        s = jnp.einsum('btd,bsd->bts', q3, k3,
                       preferred_element_type=f32) + kb   # (Bb, T, T)
        m = jnp.max(s, axis=-1, keepdims=True)
        p = jnp.exp(s - m)
        denom = jnp.sum(p, axis=-1, keepdims=True)
        p = p * pl.reciprocal(denom, approx=True)
        ctx = jnp.einsum('bts,bsd->btd', p, v3,
                         preferred_element_type=f32).reshape(N, D_HEAD)
        attn = attn + jnp.dot(ctx, wo_ref[hd], preferred_element_type=f32)

    x1 = (x0 + attn) * nonpad

    # ---------------- emotion conv-FFN block ----------------
    h2 = _layer_norm(x1, lnp_ref[2:3, :], lnp_ref[3:4, :])

    # zero only the SAME-conv halo rows (interior rows are fully rewritten);
    # emotion channels are written like the PyTorch channel concat, so edge
    # behaviour (zero padding of the emotion channels) is automatic.
    zhalo = jnp.zeros((Bb, PAD, CE), f32)
    pad_ref[:, :PAD, :] = zhalo
    pad_ref[:, PAD + T:, :] = zhalo
    pad_ref[:, PAD:PAD + T, :Cc] = h2.reshape(Bb, T, Cc)
    pad_ref[:, PAD:PAD + T, Cc:] = jnp.broadcast_to(emo[:, None, :E], (Bb, T, E))

    # conv weight pre-scaled by K**-0.5; K accumulated matmuls (no im2col concat).
    acc = jnp.dot(pad_ref[:, 0:T, :].reshape(N, CE), convw_ref[0],
                  preferred_element_type=f32)
    for kk in range(1, K):
        acc = acc + jnp.dot(pad_ref[:, kk:kk + T, :].reshape(N, CE),
                            convw_ref[kk], preferred_element_type=f32)
    acc = acc + convb_ref[...]                            # (1, F) broadcast
    g = _gelu_tanh(acc)

    ffn = jnp.dot(g, w2h_ref[...], preferred_element_type=f32)      # (N, C)
    bias2 = jnp.dot(emo, w2e_ref[...], preferred_element_type=f32)  # (Bb, C)

    out = (x1 + ffn).reshape(Bb, T, Cc) + bias2[:, None, :]
    out = out * nonpad3
    o_ref[...] = out.astype(o_ref.dtype)


def emotion_enc_sa_layer(params, emotion, x, encoder_padding_mask, block_b=None):
    """Pallas TPU implementation of EmotionEncSALayer.forward (eval mode).

    x: (T, B, C) float32, emotion: (B, E), encoder_padding_mask: (B, T) bool.
    Returns (T, B, C) float32.
    """
    T, B, Cc = x.shape
    assert Cc == C and emotion.shape == (B, E)
    f32 = jnp.float32

    x_btc = jnp.transpose(x, (1, 0, 2)).astype(f32)              # (B, T, C)
    mask_b = encoder_padding_mask
    key_bias = jnp.where(mask_b, NEG_INF, np.float32(0.0)).astype(f32)
    key_bias = key_bias.reshape(B, 1, T)                         # additive key mask
    nonpad = (1.0 - mask_b.astype(f32)).reshape(B, T, 1)         # row mask
    emo_aug = jnp.concatenate(
        [emotion.astype(f32), jnp.ones((B, 1), f32)], axis=1)    # (B, E+1)

    # ---- repack / pre-fold parameters (small, done once in XLA) ----
    lnp = jnp.stack([params["ln1_w"], params["ln1_b"],
                     params["ln2_w"], params["ln2_b"]], axis=0).astype(f32)

    scale = np.float32(D_HEAD ** -0.5)
    wq_h = (params["wq"].T * scale).reshape(C, H, D_HEAD).transpose(1, 0, 2)
    wk_h = params["wk"].T.reshape(C, H, D_HEAD).transpose(1, 0, 2)
    wv_h = params["wv"].T.reshape(C, H, D_HEAD).transpose(1, 0, 2)
    wqkv_heads = jnp.concatenate([wq_h, wk_h, wv_h], axis=0).astype(f32)  # (3H,C,D)
    wo_heads = params["wo"].T.reshape(H, D_HEAD, C).astype(f32)           # (H,D,C)

    kinv = np.float32(K ** -0.5)
    conv_w = jnp.transpose(params["conv_w"], (2, 1, 0)).astype(f32)  # (K, E+C, F)
    # reorder channels to [hidden | emotion] to match the pad-scratch layout
    conv_whe = jnp.concatenate([conv_w[:, E:, :], conv_w[:, :E, :]],
                               axis=1) * kinv                        # (K, C+E, F)
    conv_b = (params["conv_b"] * kinv).reshape(1, F).astype(f32)

    w2 = params["w2"].T.astype(f32)                                  # (E+F, C)
    w2h = w2[E:, :]                                                  # (F, C)
    w2e_full = jnp.concatenate(
        [w2[:E, :], params["b2"].reshape(1, C).astype(f32)], axis=0)  # (E+1, C)

    # ---- batch blocking (amortise per-step overhead, keep VMEM bounded) ----
    if block_b is None:
        block_b = max(1, min(4096 // max(T, 1), (1 << 20) // max(T * T, 1)))
    Bb = max(1, min(B, block_b))
    if Bb < B:
        Bb = min(B, max(8, (Bb // 8) * 8))   # 8-align the leading block dim
    nb = pl.cdiv(B, Bb)
    Bp = nb * Bb
    if Bp != B:
        padb = Bp - B
        x_btc = jnp.pad(x_btc, ((0, padb), (0, 0), (0, 0)))
        key_bias = jnp.pad(key_bias, ((0, padb), (0, 0), (0, 0)),
                           constant_values=NEG_INF)                  # fake rows masked
        nonpad = jnp.pad(nonpad, ((0, padb), (0, 0), (0, 0)))
        emo_aug = jnp.pad(emo_aug, ((0, padb), (0, 0)))

    grid_spec = pltpu.PrefetchScalarGridSpec(
        num_scalar_prefetch=0,
        grid=(nb,),
        in_specs=[
            pl.BlockSpec((Bb, T, C), lambda b: (b, 0, 0)),          # x
            pl.BlockSpec((Bb, 1, T), lambda b: (b, 0, 0)),          # additive key mask
            pl.BlockSpec((Bb, T, 1), lambda b: (b, 0, 0)),          # non-pad row mask
            pl.BlockSpec((Bb, E + 1), lambda b: (b, 0)),            # [emotion | 1]
            pl.BlockSpec((4, C), lambda b: (0, 0)),                 # packed LN params
            pl.BlockSpec((3 * H, C, D_HEAD), lambda b: (0, 0, 0)),  # per-head Wq|Wk|Wv
            pl.BlockSpec((H, D_HEAD, C), lambda b: (0, 0, 0)),      # per-head Wo
            pl.BlockSpec((K, CE, F), lambda b: (0, 0, 0)),          # conv taps (C+E in)
            pl.BlockSpec((1, F), lambda b: (0, 0)),                 # conv bias * K^-0.5
            pl.BlockSpec((E + 1, C), lambda b: (0, 0)),             # emotion W2 rows + b2
            pl.BlockSpec((F, C), lambda b: (0, 0)),                 # W2 (hidden part)
        ],
        out_specs=pl.BlockSpec((Bb, T, C), lambda b: (b, 0, 0)),
        scratch_shapes=[pltpu.VMEM((Bb, T + K - 1, CE), jnp.float32)],
    )

    out_btc = pl.pallas_call(
        _emotion_enc_sa_kernel,
        out_shape=jax.ShapeDtypeStruct((Bp, T, C), f32),
        grid_spec=grid_spec,
        compiler_params=pltpu.CompilerParams(
            dimension_semantics=("parallel",),
            vmem_limit_bytes=48 * 1024 * 1024),
    )(x_btc, key_bias, nonpad, emo_aug, lnp, wqkv_heads, wo_heads,
      conv_whe, conv_b, w2e_full, w2h)

    return jnp.transpose(out_btc[:B], (1, 0, 2))


def init_params(key):
    ks = jax.random.split(key, 12)

    def nrm(k, shape, fan_in):
        return jax.random.normal(k, shape, jnp.float32) / np.float32(np.sqrt(fan_in))

    return {
        "ln1_w": 1.0 + 0.1 * jax.random.normal(ks[0], (C,), jnp.float32),
        "ln1_b": 0.1 * jax.random.normal(ks[1], (C,), jnp.float32),
        "wq": nrm(ks[2], (C, C), C),
        "wk": nrm(ks[3], (C, C), C),
        "wv": nrm(ks[4], (C, C), C),
        "wo": nrm(ks[5], (C, C), C),
        "ln2_w": 1.0 + 0.1 * jax.random.normal(ks[6], (C,), jnp.float32),
        "ln2_b": 0.1 * jax.random.normal(ks[7], (C,), jnp.float32),
        "conv_w": nrm(ks[8], (F, E + C, K), (E + C) * K),   # torch Conv1d layout
        "conv_b": 0.1 * jax.random.normal(ks[9], (F,), jnp.float32),
        "w2": nrm(ks[10], (C, E + F), E + F),               # torch Linear layout
        "b2": 0.1 * jax.random.normal(ks[11], (C,), jnp.float32),
    }


def reference(params, emotion, x, mask):
    """Pure-JAX reference mirroring the PyTorch forward (eval mode)."""
    hp = lax.Precision.HIGHEST
    T_, B_, _ = x.shape
    x = x.astype(jnp.float32)
    emotion = emotion.astype(jnp.float32)
    mask_f = mask.astype(jnp.float32)
    nonpad = (1.0 - mask_f).T[:, :, None]                # (T, B, 1)

    def ln(v, w, b):
        mu = v.mean(-1, keepdims=True)
        var = ((v - mu) ** 2).mean(-1, keepdims=True)
        return (v - mu) / jnp.sqrt(var + LN_EPS) * w + b

    residual = x
    h = ln(x, params["ln1_w"], params["ln1_b"])
    q = jnp.einsum("tbc,dc->tbd", h, params["wq"], precision=hp) * (D_HEAD ** -0.5)
    k = jnp.einsum("tbc,dc->tbd", h, params["wk"], precision=hp)
    v = jnp.einsum("tbc,dc->tbd", h, params["wv"], precision=hp)
    qh = q.reshape(T_, B_, H, D_HEAD)
    kh = k.reshape(T_, B_, H, D_HEAD)
    vh = v.reshape(T_, B_, H, D_HEAD)
    s = jnp.einsum("tbhd,sbhd->bhts", qh, kh, precision=hp)
    s = jnp.where(mask_f[:, None, None, :] > 0.5, -1e30, s)
    p = jax.nn.softmax(s, axis=-1)
    ctx = jnp.einsum("bhts,sbhd->tbhd", p, vh, precision=hp).reshape(T_, B_, C)
    attn = jnp.einsum("tbc,dc->tbd", ctx, params["wo"], precision=hp)
    x = residual + attn
    x = x * nonpad

    residual = x
    h2 = ln(x, params["ln2_w"], params["ln2_b"])
    h_nct = jnp.transpose(h2, (1, 2, 0))                           # (B, C, T)
    emo_nct = jnp.tile(emotion[:, :, None], (1, 1, T_))            # (B, E, T)
    inp = jnp.concatenate([emo_nct, h_nct], axis=1)                # (B, E+C, T)
    inp_pad = jnp.pad(inp, ((0, 0), (0, 0), (K // 2, K // 2)))
    conv = jnp.zeros((B_, F, T_), jnp.float32) + params["conv_b"][None, :, None]
    for kk in range(K):
        conv = conv + jnp.einsum("bct,oc->bot", inp_pad[:, :, kk:kk + T_],
                                 params["conv_w"][:, :, kk], precision=hp)
    conv = conv * (K ** -0.5)
    act = jax.nn.gelu(conv, approximate=False)
    act_btf = jnp.transpose(act, (0, 2, 1))                        # (B, T, F)
    emo_bt = jnp.tile(emotion[:, None, :], (1, T_, 1))             # (B, T, E)
    lin_in = jnp.concatenate([emo_bt, act_btf], axis=-1)           # (B, T, E+F)
    lin = jnp.einsum("btf,cf->btc", lin_in, params["w2"], precision=hp) + params["b2"]
    ffn = jnp.transpose(lin, (1, 0, 2))
    x = residual + ffn
    x = x * nonpad
    return x


if __name__ == "__main__":
    T_, B_ = 8, 2
    key = jax.random.PRNGKey(0)
    k_param, k_x, k_emo = jax.random.split(key, 3)

    params = init_params(k_param)
    x = jax.random.normal(k_x, (T_, B_, C), jnp.float32)           # (T, B, C)
    emotion = jax.random.normal(k_emo, (B_, E), jnp.float32)       # (B, E)
    lengths = jnp.array([T_, T_ - 3])
    encoder_padding_mask = jnp.arange(T_)[None, :] >= lengths[:, None]  # (B, T) bool

    out = emotion_enc_sa_layer(params, emotion, x, encoder_padding_mask)
    out = jax.block_until_ready(out)

    ref = reference(params, emotion, x, encoder_padding_mask)
    np.testing.assert_allclose(np.asarray(out), np.asarray(ref), rtol=5e-3, atol=5e-3)
    print("KERNEL_OK")
</pallas_src>

<mosaic_0001>
module attributes {stable_mosaic.version = 11 : i64} {
  func.func @_emotion_enc_sa_kernel(%arg0: i32, %arg1: memref<2x8x32xf32, #tpu.memory_space<vmem>>, %arg2: memref<2x1x8xf32, #tpu.memory_space<vmem>>, %arg3: memref<2x8x1xf32, #tpu.memory_space<vmem>>, %arg4: memref<2x9xf32, #tpu.memory_space<vmem>>, %arg5: memref<4x32xf32, #tpu.memory_space<vmem>>, %arg6: memref<12x32x8xf32, #tpu.memory_space<vmem>>, %arg7: memref<4x8x32xf32, #tpu.memory_space<vmem>>, %arg8: memref<9x40x128xf32, #tpu.memory_space<vmem>>, %arg9: memref<1x128xf32, #tpu.memory_space<vmem>>, %arg10: memref<9x32xf32, #tpu.memory_space<vmem>>, %arg11: memref<128x32xf32, #tpu.memory_space<vmem>>, %arg12: memref<2x8x32xf32, #tpu.memory_space<vmem>>, %arg13: memref<2x16x40xf32, #tpu.memory_space<vmem>>) attributes {dimension_semantics = [#tpu.dimension_semantics<parallel>], iteration_bounds = array<i64: 1>, scalar_prefetch = 0 : i64, scratch_operands = 1 : i64, tpu.core_type = #tpu.core_type<tc>, window_params = [{transform_indices = @transform_0, window_bounds = array<i64: 2, 8, 32>}, {transform_indices = @transform_1, window_bounds = array<i64: 2, 1, 8>}, {transform_indices = @transform_2, window_bounds = array<i64: 2, 8, 1>}, {transform_indices = @transform_3, window_bounds = array<i64: 2, 9>}, {pipeline_mode = #tpu.pipeline_mode<synchronous>, transform_indices = @transform_4, window_bounds = array<i64: 4, 32>}, {pipeline_mode = #tpu.pipeline_mode<synchronous>, transform_indices = @transform_5, window_bounds = array<i64: 12, 32, 8>}, {pipeline_mode = #tpu.pipeline_mode<synchronous>, transform_indices = @transform_6, window_bounds = array<i64: 4, 8, 32>}, {pipeline_mode = #tpu.pipeline_mode<synchronous>, transform_indices = @transform_7, window_bounds = array<i64: 9, 40, 128>}, {pipeline_mode = #tpu.pipeline_mode<synchronous>, transform_indices = @transform_8, window_bounds = array<i64: 1, 128>}, {pipeline_mode = #tpu.pipeline_mode<synchronous>, transform_indices = @transform_9, window_bounds = array<i64: 9, 32>}, {pipeline_mode = #tpu.pipeline_mode<synchronous>, transform_indices = @transform_10, window_bounds = array<i64: 128, 32>}, {transform_indices = @transform_11, window_bounds = array<i64: 2, 8, 32>}]} {
    %c0 = arith.constant 0 : index
    %c0_0 = arith.constant 0 : index
    %c0_1 = arith.constant 0 : index
    %0 = vector.load %arg1[%c0, %c0_0, %c0_1] : memref<2x8x32xf32, #tpu.memory_space<vmem>>, vector<2x8x32xf32>
    %1 = vector.shape_cast %0 : vector<2x8x32xf32> to vector<16x32xf32>
    %c0_2 = arith.constant 0 : index
    %c0_3 = arith.constant 0 : index
    %c0_4 = arith.constant 0 : index
    %2 = vector.load %arg3[%c0_2, %c0_3, %c0_4] : memref<2x8x1xf32, #tpu.memory_space<vmem>>, vector<2x8x1xf32>
    %3 = vector.shape_cast %2 : vector<2x8x1xf32> to vector<16x1xf32>
    %c0_5 = arith.constant 0 : index
    %c0_6 = arith.constant 0 : index
    %4 = vector.load %arg4[%c0_5, %c0_6] : memref<2x9xf32, #tpu.memory_space<vmem>>, vector<2x9xf32>
    %c0_7 = arith.constant 0 : index
    %c0_8 = arith.constant 0 : index
    %5 = vector.load %arg5[%c0_7, %c0_8] : memref<4x32xf32, #tpu.memory_space<vmem>>, vector<1x32xf32>
    %c1 = arith.constant 1 : index
    %c0_9 = arith.constant 0 : index
    %6 = vector.load %arg5[%c1, %c0_9] : memref<4x32xf32, #tpu.memory_space<vmem>>, vector<1x32xf32>
    %cst = arith.constant dense<0.000000e+00> : vector<16xf32>
    %7 = vector.multi_reduction <add>, %1, %cst [1] : vector<16x32xf32> to vector<16xf32>
    %8 = vector.shape_cast %7 : vector<16xf32> to vector<16x1xf32>
    %cst_10 = arith.constant 3.200000e+01 : f32
    %9 = vector.broadcast %cst_10 : f32 to vector<16x1xf32>
    %10 = arith.divf %8, %9 : vector<16x1xf32>
    %11 = vector.broadcast %10 : vector<16x1xf32> to vector<16x32xf32>
    %12 = arith.subf %1, %11 : vector<16x32xf32>
    %13 = arith.mulf %12, %12 : vector<16x32xf32>
    %cst_11 = arith.constant dense<0.000000e+00> : vector<16xf32>
    %14 = vector.multi_reduction <add>, %13, %cst_11 [1] : vector<16x32xf32> to vector<16xf32>
    %15 = vector.shape_cast %14 : vector<16xf32> to vector<16x1xf32>
    %cst_12 = arith.constant 3.200000e+01 : f32
    %16 = vector.broadcast %cst_12 : f32 to vector<16x1xf32>
    %17 = arith.divf %15, %16 : vector<16x1xf32>
    %cst_13 = arith.constant 9.99999974E-6 : f32
    %18 = vector.broadcast %cst_13 : f32 to vector<16x1xf32>
    %19 = arith.addf %17, %18 : vector<16x1xf32>
    %20 = math.rsqrt %19 : vector<16x1xf32>
    %21 = vector.broadcast %20 : vector<16x1xf32> to vector<16x32xf32>
    %22 = arith.mulf %12, %21 : vector<16x32xf32>
    %23 = vector.broadcast %5 : vector<1x32xf32> to vector<16x32xf32>
    %24 = arith.mulf %22, %23 : vector<16x32xf32>
    %25 = vector.broadcast %6 : vector<1x32xf32> to vector<16x32xf32>
    %26 = arith.addf %24, %25 : vector<16x32xf32>
    %c0_14 = arith.constant 0 : index
    %c0_15 = arith.constant 0 : index
    %c0_16 = arith.constant 0 : index
    %27 = vector.load %arg2[%c0_14, %c0_15, %c0_16] : memref<2x1x8xf32, #tpu.memory_space<vmem>>, vector<2x1x8xf32>
    %28 = vector.shape_cast %27 : vector<2x1x8xf32> to vector<2x1x8xf32>
    %29 = vector.broadcast %28 : vector<2x1x8xf32> to vector<2x8x8xf32>
    %cst_17 = arith.constant 0.000000e+00 : f32
    %30 = vector.broadcast %cst_17 : f32 to vector<16x32xf32>
    %c0_18 = arith.constant 0 : index
    %c0_19 = arith.constant 0 : index
    %c0_20 = arith.constant 0 : index
    %31 = vector.load %arg6[%c0_18, %c0_19, %c0_20] : memref<12x32x8xf32, #tpu.memory_space<vmem>>, vector<1x32x8xf32>
    %32 = vector.shape_cast %31 : vector<1x32x8xf32> to vector<32x8xf32>
    %cst_21 = arith.constant dense<0.000000e+00> : vector<16x8xf32>
    %33 = tpu.matmul %26, %32, %cst_21 {dimension_numbers = #tpu.dot_dimension_numbers<[1], [0], [0], [1], [0, 0, 1, 1], [], []>} : vector<16x32xf32>, vector<32x8xf32>, vector<16x8xf32> -> vector<16x8xf32>
    %c4 = arith.constant 4 : index
    %c0_22 = arith.constant 0 : index
    %c0_23 = arith.constant 0 : index
    %34 = vector.load %arg6[%c4, %c0_22, %c0_23] : memref<12x32x8xf32, #tpu.memory_space<vmem>>, vector<1x32x8xf32>
    %35 = vector.shape_cast %34 : vector<1x32x8xf32> to vector<32x8xf32>
    %cst_24 = arith.constant dense<0.000000e+00> : vector<16x8xf32>
    %36 = tpu.matmul %26, %35, %cst_24 {dimension_numbers = #tpu.dot_dimension_numbers<[1], [0], [0], [1], [0, 0, 1, 1], [], []>} : vector<16x32xf32>, vector<32x8xf32>, vector<16x8xf32> -> vector<16x8xf32>
    %c8 = arith.constant 8 : index
    %c0_25 = arith.constant 0 : index
    %c0_26 = arith.constant 0 : index
    %37 = vector.load %arg6[%c8, %c0_25, %c0_26] : memref<12x32x8xf32, #tpu.memory_space<vmem>>, vector<1x32x8xf32>
    %38 = vector.shape_cast %37 : vector<1x32x8xf32> to vector<32x8xf32>
    %cst_27 = arith.constant dense<0.000000e+00> : vector<16x8xf32>
    %39 = tpu.matmul %26, %38, %cst_27 {dimension_numbers = #tpu.dot_dimension_numbers<[1], [0], [0], [1], [0, 0, 1, 1], [], []>} : vector<16x32xf32>, vector<32x8xf32>, vector<16x8xf32> -> vector<16x8xf32>
    %40 = vector.shape_cast %33 : vector<16x8xf32> to vector<2x8x8xf32>
    %41 = vector.shape_cast %36 : vector<16x8xf32> to vector<2x8x8xf32>
    %42 = vector.shape_cast %39 : vector<16x8xf32> to vector<2x8x8xf32>
    "tpu.trace_start"() <{level = 10 : i32, message = "btd,bsd->bts"}> : () -> ()
    %cst_28 = arith.constant dense<0.000000e+00> : vector<2x8x8xf32>
    %43 = tpu.matmul %40, %41, %cst_28 {dimension_numbers = #tpu.dot_dimension_numbers<[2], [2], [1], [1], [0, 0, 0, 1, 1, 1], [0], [0]>} : vector<2x8x8xf32>, vector<2x8x8xf32>, vector<2x8x8xf32> -> vector<2x8x8xf32>
    "tpu.trace_stop"() : () -> ()
    %44 = arith.addf %43, %29 : vector<2x8x8xf32>
    %cst_29 = arith.constant dense<0xFF800000> : vector<2x8xf32>
    %45 = vector.multi_reduction <maximumf>, %44, %cst_29 [2] : vector<2x8x8xf32> to vector<2x8xf32>
    %46 = vector.shape_cast %45 : vector<2x8xf32> to vector<2x8x1xf32>
    %47 = vector.broadcast %46 : vector<2x8x1xf32> to vector<2x8x8xf32>
    %48 = arith.subf %44, %47 : vector<2x8x8xf32>
    %49 = math.exp %48 : vector<2x8x8xf32>
    %cst_30 = arith.constant dense<0.000000e+00> : vector<2x8xf32>
    %50 = vector.multi_reduction <add>, %49, %cst_30 [2] : vector<2x8x8xf32> to vector<2x8xf32>
    %51 = vector.shape_cast %50 : vector<2x8xf32> to vector<2x8x1xf32>
    %52 = tpu.reciprocal %51 {approx = true} : vector<2x8x1xf32> -> vector<2x8x1xf32>
    %53 = vector.broadcast %52 : vector<2x8x1xf32> to vector<2x8x8xf32>
    %54 = arith.mulf %49, %53 : vector<2x8x8xf32>
    "tpu.trace_start"() <{level = 10 : i32, message = "bts,bsd->btd"}> : () -> ()
    %cst_31 = arith.constant dense<0.000000e+00> : vector<2x8x8xf32>
    %55 = tpu.matmul %54, %42, %cst_31 {dimension_numbers = #tpu.dot_dimension_numbers<[2], [1], [1], [2], [0, 0, 0, 1, 1, 2], [0], [0]>} : vector<2x8x8xf32>, vector<2x8x8xf32>, vector<2x8x8xf32> -> vector<2x8x8xf32>
    "tpu.trace_stop"() : () -> ()
    %56 = vector.shape_cast %55 : vector<2x8x8xf32> to vector<16x8xf32>
    %c0_32 = arith.constant 0 : index
    %c0_33 = arith.constant 0 : index
    %c0_34 = arith.constant 0 : index
    %57 = vector.load %arg7[%c0_32, %c0_33, %c0_34] : memref<4x8x32xf32, #tpu.memory_space<vmem>>, vector<1x8x32xf32>
    %58 = vector.shape_cast %57 : vector<1x8x32xf32> to vector<8x32xf32>
    %cst_35 = arith.constant dense<0.000000e+00> : vector<16x32xf32>
    %59 = tpu.matmul %56, %58, %cst_35 {dimension_numbers = #tpu.dot_dimension_numbers<[1], [0], [0], [1], [0, 0, 1, 1], [], []>} : vector<16x8xf32>, vector<8x32xf32>, vector<16x32xf32> -> vector<16x32xf32>
    %60 = arith.addf %30, %59 : vector<16x32xf32>
    %c1_36 = arith.constant 1 : index
    %c0_37 = arith.constant 0 : index
    %c0_38 = arith.constant 0 : index
    %61 = vector.load %arg6[%c1_36, %c0_37, %c0_38] : memref<12x32x8xf32, #tpu.memory_space<vmem>>, vector<1x32x8xf32>
    %62 = vector.shape_cast %61 : vector<1x32x8xf32> to vector<32x8xf32>
    %cst_39 = arith.constant dense<0.000000e+00> : vector<16x8xf32>
    %63 = tpu.matmul %26, %62, %cst_39 {dimension_numbers = #tpu.dot_dimension_numbers<[1], [0], [0], [1], [0, 0, 1, 1], [], []>} : vector<16x32xf32>, vector<32x8xf32>, vector<16x8xf32> -> vector<16x8xf32>
    %c5 = arith.constant 5 : index
    %c0_40 = arith.constant 0 : index
    %c0_41 = arith.constant 0 : index
    %64 = vector.load %arg6[%c5, %c0_40, %c0_41] : memref<12x32x8xf32, #tpu.memory_space<vmem>>, vector<1x32x8xf32>
    %65 = vector.shape_cast %64 : vector<1x32x8xf32> to vector<32x8xf32>
    %cst_42 = arith.constant dense<0.000000e+00> : vector<16x8xf32>
    %66 = tpu.matmul %26, %65, %cst_42 {dimension_numbers = #tpu.dot_dimension_numbers<[1], [0], [0], [1], [0, 0, 1, 1], [], []>} : vector<16x32xf32>, vector<32x8xf32>, vector<16x8xf32> -> vector<16x8xf32>
    %c9 = arith.constant 9 : index
    %c0_43 = arith.constant 0 : index
    %c0_44 = arith.constant 0 : index
    %67 = vector.load %arg6[%c9, %c0_43, %c0_44] : memref<12x32x8xf32, #tpu.memory_space<vmem>>, vector<1x32x8xf32>
    %68 = vector.shape_cast %67 : vector<1x32x8xf32> to vector<32x8xf32>
    %cst_45 = arith.constant dense<0.000000e+00> : vector<16x8xf32>
    %69 = tpu.matmul %26, %68, %cst_45 {dimension_numbers = #tpu.dot_dimension_numbers<[1], [0], [0], [1], [0, 0, 1, 1], [], []>} : vector<16x32xf32>, vector<32x8xf32>, vector<16x8xf32> -> vector<16x8xf32>
    %70 = vector.shape_cast %63 : vector<16x8xf32> to vector<2x8x8xf32>
    %71 = vector.shape_cast %66 : vector<16x8xf32> to vector<2x8x8xf32>
    %72 = vector.shape_cast %69 : vector<16x8xf32> to vector<2x8x8xf32>
    "tpu.trace_start"() <{level = 10 : i32, message = "btd,bsd->bts"}> : () -> ()
    %cst_46 = arith.constant dense<0.000000e+00> : vector<2x8x8xf32>
    %73 = tpu.matmul %70, %71, %cst_46 {dimension_numbers = #tpu.dot_dimension_numbers<[2], [2], [1], [1], [0, 0, 0, 1, 1, 1], [0], [0]>} : vector<2x8x8xf32>, vector<2x8x8xf32>, vector<2x8x8xf32> -> vector<2x8x8xf32>
    "tpu.trace_stop"() : () -> ()
    %74 = arith.addf %73, %29 : vector<2x8x8xf32>
    %cst_47 = arith.constant dense<0xFF800000> : vector<2x8xf32>
    %75 = vector.multi_reduction <maximumf>, %74, %cst_47 [2] : vector<2x8x8xf32> to vector<2x8xf32>
    %76 = vector.shape_cast %75 : vector<2x8xf32> to vector<2x8x1xf32>
    %77 = vector.broadcast %76 : vector<2x8x1xf32> to vector<2x8x8xf32>
    %78 = arith.subf %74, %77 : vector<2x8x8xf32>
    %79 = math.exp %78 : vector<2x8x8xf32>
    %cst_48 = arith.constant dense<0.000000e+00> : vector<2x8xf32>
    %80 = vector.multi_reduction <add>, %79, %cst_48 [2] : vector<2x8x8xf32> to vector<2x8xf32>
    %81 = vector.shape_cast %80 : vector<2x8xf32> to vector<2x8x1xf32>
    %82 = tpu.reciprocal %81 {approx = true} : vector<2x8x1xf32> -> vector<2x8x1xf32>
    %83 = vector.broadcast %82 : vector<2x8x1xf32> to vector<2x8x8xf32>
    %84 = arith.mulf %79, %83 : vector<2x8x8xf32>
    "tpu.trace_start"() <{level = 10 : i32, message = "bts,bsd->btd"}> : () -> ()
    %cst_49 = arith.constant dense<0.000000e+00> : vector<2x8x8xf32>
    %85 = tpu.matmul %84, %72, %cst_49 {dimension_numbers = #tpu.dot_dimension_numbers<[2], [1], [1], [2], [0, 0, 0, 1, 1, 2], [0], [0]>} : vector<2x8x8xf32>, vector<2x8x8xf32>, vector<2x8x8xf32> -> vector<2x8x8xf32>
    "tpu.trace_stop"() : () -> ()
    %86 = vector.shape_cast %85 : vector<2x8x8xf32> to vector<16x8xf32>
    %c1_50 = arith.constant 1 : index
    %c0_51 = arith.constant 0 : index
    %c0_52 = arith.constant 0 : index
    %87 = vector.load %arg7[%c1_50, %c0_51, %c0_52] : memref<4x8x32xf32, #tpu.memory_space<vmem>>, vector<1x8x32xf32>
    %88 = vector.shape_cast %87 : vector<1x8x32xf32> to vector<8x32xf32>
    %cst_53 = arith.constant dense<0.000000e+00> : vector<16x32xf32>
    %89 = tpu.matmul %86, %88, %cst_53 {dimension_numbers = #tpu.dot_dimension_numbers<[1], [0], [0], [1], [0, 0, 1, 1], [], []>} : vector<16x8xf32>, vector<8x32xf32>, vector<16x32xf32> -> vector<16x32xf32>
    %90 = arith.addf %60, %89 : vector<16x32xf32>
    %c2 = arith.constant 2 : index
    %c0_54 = arith.constant 0 : index
    %c0_55 = arith.constant 0 : index
    %91 = vector.load %arg6[%c2, %c0_54, %c0_55] : memref<12x32x8xf32, #tpu.memory_space<vmem>>, vector<1x32x8xf32>
    %92 = vector.shape_cast %91 : vector<1x32x8xf32> to vector<32x8xf32>
    %cst_56 = arith.constant dense<0.000000e+00> : vector<16x8xf32>
    %93 = tpu.matmul %26, %92, %cst_56 {dimension_numbers = #tpu.dot_dimension_numbers<[1], [0], [0], [1], [0, 0, 1, 1], [], []>} : vector<16x32xf32>, vector<32x8xf32>, vector<16x8xf32> -> vector<16x8xf32>
    %c6 = arith.constant 6 : index
    %c0_57 = arith.constant 0 : index
    %c0_58 = arith.constant 0 : index
    %94 = vector.load %arg6[%c6, %c0_57, %c0_58] : memref<12x32x8xf32, #tpu.memory_space<vmem>>, vector<1x32x8xf32>
    %95 = vector.shape_cast %94 : vector<1x32x8xf32> to vector<32x8xf32>
    %cst_59 = arith.constant dense<0.000000e+00> : vector<16x8xf32>
    %96 = tpu.matmul %26, %95, %cst_59 {dimension_numbers = #tpu.dot_dimension_numbers<[1], [0], [0], [1], [0, 0, 1, 1], [], []>} : vector<16x32xf32>, vector<32x8xf32>, vector<16x8xf32> -> vector<16x8xf32>
    %c10 = arith.constant 10 : index
    %c0_60 = arith.constant 0 : index
    %c0_61 = arith.constant 0 : index
    %97 = vector.load %arg6[%c10, %c0_60, %c0_61] : memref<12x32x8xf32, #tpu.memory_space<vmem>>, vector<1x32x8xf32>
    %98 = vector.shape_cast %97 : vector<1x32x8xf32> to vector<32x8xf32>
    %cst_62 = arith.constant dense<0.000000e+00> : vector<16x8xf32>
    %99 = tpu.matmul %26, %98, %cst_62 {dimension_numbers = #tpu.dot_dimension_numbers<[1], [0], [0], [1], [0, 0, 1, 1], [], []>} : vector<16x32xf32>, vector<32x8xf32>, vector<16x8xf32> -> vector<16x8xf32>
    %100 = vector.shape_cast %93 : vector<16x8xf32> to vector<2x8x8xf32>
    %101 = vector.shape_cast %96 : vector<16x8xf32> to vector<2x8x8xf32>
    %102 = vector.shape_cast %99 : vector<16x8xf32> to vector<2x8x8xf32>
    "tpu.trace_start"() <{level = 10 : i32, message = "btd,bsd->bts"}> : () -> ()
    %cst_63 = arith.constant dense<0.000000e+00> : vector<2x8x8xf32>
    %103 = tpu.matmul %100, %101, %cst_63 {dimension_numbers = #tpu.dot_dimension_numbers<[2], [2], [1], [1], [0, 0, 0, 1, 1, 1], [0], [0]>} : vector<2x8x8xf32>, vector<2x8x8xf32>, vector<2x8x8xf32> -> vector<2x8x8xf32>
    "tpu.trace_stop"() : () -> ()
    %104 = arith.addf %103, %29 : vector<2x8x8xf32>
    %cst_64 = arith.constant dense<0xFF800000> : vector<2x8xf32>
    %105 = vector.multi_reduction <maximumf>, %104, %cst_64 [2] : vector<2x8x8xf32> to vector<2x8xf32>
    %106 = vector.shape_cast %105 : vector<2x8xf32> to vector<2x8x1xf32>
    %107 = vector.broadcast %106 : vector<2x8x1xf32> to vector<2x8x8xf32>
    %108 = arith.subf %104, %107 : vector<2x8x8xf32>
    %109 = math.exp %108 : vector<2x8x8xf32>
    %cst_65 = arith.constant dense<0.000000e+00> : vector<2x8xf32>
    %110 = vector.multi_reduction <add>, %109, %cst_65 [2] : vector<2x8x8xf32> to vector<2x8xf32>
    %111 = vector.shape_cast %110 : vector<2x8xf32> to vector<2x8x1xf32>
    %112 = tpu.reciprocal %111 {approx = true} : vector<2x8x1xf32> -> vector<2x8x1xf32>
    %113 = vector.broadcast %112 : vector<2x8x1xf32> to vector<2x8x8xf32>
    %114 = arith.mulf %109, %113 : vector<2x8x8xf32>
    "tpu.trace_start"() <{level = 10 : i32, message = "bts,bsd->btd"}> : () -> ()
    %cst_66 = arith.constant dense<0.000000e+00> : vector<2x8x8xf32>
    %115 = tpu.matmul %114, %102, %cst_66 {dimension_numbers = #tpu.dot_dimension_numbers<[2], [1], [1], [2], [0, 0, 0, 1, 1, 2], [0], [0]>} : vector<2x8x8xf32>, vector<2x8x8xf32>, vector<2x8x8xf32> -> vector<2x8x8xf32>
    "tpu.trace_stop"() : () -> ()
    %116 = vector.shape_cast %115 : vector<2x8x8xf32> to vector<16x8xf32>
    %c2_67 = arith.constant 2 : index
    %c0_68 = arith.constant 0 : index
    %c0_69 = arith.constant 0 : index
    %117 = vector.load %arg7[%c2_67, %c0_68, %c0_69] : memref<4x8x32xf32, #tpu.memory_space<vmem>>, vector<1x8x32xf32>
    %118 = vector.shape_cast %117 : vector<1x8x32xf32> to vector<8x32xf32>
    %cst_70 = arith.constant dense<0.000000e+00> : vector<16x32xf32>
    %119 = tpu.matmul %116, %118, %cst_70 {dimension_numbers = #tpu.dot_dimension_numbers<[1], [0], [0], [1], [0, 0, 1, 1], [], []>} : vector<16x8xf32>, vector<8x32xf32>, vector<16x32xf32> -> vector<16x32xf32>
    %120 = arith.addf %90, %119 : vector<16x32xf32>
    %c3 = arith.constant 3 : index
    %c0_71 = arith.constant 0 : index
    %c0_72 = arith.constant 0 : index
    %121 = vector.load %arg6[%c3, %c0_71, %c0_72] : memref<12x32x8xf32, #tpu.memory_space<vmem>>, vector<1x32x8xf32>
    %122 = vector.shape_cast %121 : vector<1x32x8xf32> to vector<32x8xf32>
    %cst_73 = arith.constant dense<0.000000e+00> : vector<16x8xf32>
    %123 = tpu.matmul %26, %122, %cst_73 {dimension_numbers = #tpu.dot_dimension_numbers<[1], [0], [0], [1], [0, 0, 1, 1], [], []>} : vector<16x32xf32>, vector<32x8xf32>, vector<16x8xf32> -> vector<16x8xf32>
    %c7 = arith.constant 7 : index
    %c0_74 = arith.constant 0 : index
    %c0_75 = arith.constant 0 : index
    %124 = vector.load %arg6[%c7, %c0_74, %c0_75] : memref<12x32x8xf32, #tpu.memory_space<vmem>>, vector<1x32x8xf32>
    %125 = vector.shape_cast %124 : vector<1x32x8xf32> to vector<32x8xf32>
    %cst_76 = arith.constant dense<0.000000e+00> : vector<16x8xf32>
    %126 = tpu.matmul %26, %125, %cst_76 {dimension_numbers = #tpu.dot_dimension_numbers<[1], [0], [0], [1], [0, 0, 1, 1], [], []>} : vector<16x32xf32>, vector<32x8xf32>, vector<16x8xf32> -> vector<16x8xf32>
    %c11 = arith.constant 11 : index
    %c0_77 = arith.constant 0 : index
    %c0_78 = arith.constant 0 : index
    %127 = vector.load %arg6[%c11, %c0_77, %c0_78] : memref<12x32x8xf32, #tpu.memory_space<vmem>>, vector<1x32x8xf32>
    %128 = vector.shape_cast %127 : vector<1x32x8xf32> to vector<32x8xf32>
    %cst_79 = arith.constant dense<0.000000e+00> : vector<16x8xf32>
    %129 = tpu.matmul %26, %128, %cst_79 {dimension_numbers = #tpu.dot_dimension_numbers<[1], [0], [0], [1], [0, 0, 1, 1], [], []>} : vector<16x32xf32>, vector<32x8xf32>, vector<16x8xf32> -> vector<16x8xf32>
    %130 = vector.shape_cast %123 : vector<16x8xf32> to vector<2x8x8xf32>
    %131 = vector.shape_cast %126 : vector<16x8xf32> to vector<2x8x8xf32>
    %132 = vector.shape_cast %129 : vector<16x8xf32> to vector<2x8x8xf32>
    "tpu.trace_start"() <{level = 10 : i32, message = "btd,bsd->bts"}> : () -> ()
    %cst_80 = arith.constant dense<0.000000e+00> : vector<2x8x8xf32>
    %133 = tpu.matmul %130, %131, %cst_80 {dimension_numbers = #tpu.dot_dimension_numbers<[2], [2], [1], [1], [0, 0, 0, 1, 1, 1], [0], [0]>} : vector<2x8x8xf32>, vector<2x8x8xf32>, vector<2x8x8xf32> -> vector<2x8x8xf32>
    "tpu.trace_stop"() : () -> ()
    %134 = arith.addf %133, %29 : vector<2x8x8xf32>
    %cst_81 = arith.constant dense<0xFF800000> : vector<2x8xf32>
    %135 = vector.multi_reduction <maximumf>, %134, %cst_81 [2] : vector<2x8x8xf32> to vector<2x8xf32>
    %136 = vector.shape_cast %135 : vector<2x8xf32> to vector<2x8x1xf32>
    %137 = vector.broadcast %136 : vector<2x8x1xf32> to vector<2x8x8xf32>
    %138 = arith.subf %134, %137 : vector<2x8x8xf32>
    %139 = math.exp %138 : vector<2x8x8xf32>
    %cst_82 = arith.constant dense<0.000000e+00> : vector<2x8xf32>
    %140 = vector.multi_reduction <add>, %139, %cst_82 [2] : vector<2x8x8xf32> to vector<2x8xf32>
    %141 = vector.shape_cast %140 : vector<2x8xf32> to vector<2x8x1xf32>
    %142 = tpu.reciprocal %141 {approx = true} : vector<2x8x1xf32> -> vector<2x8x1xf32>
    %143 = vector.broadcast %142 : vector<2x8x1xf32> to vector<2x8x8xf32>
    %144 = arith.mulf %139, %143 : vector<2x8x8xf32>
    "tpu.trace_start"() <{level = 10 : i32, message = "bts,bsd->btd"}> : () -> ()
    %cst_83 = arith.constant dense<0.000000e+00> : vector<2x8x8xf32>
    %145 = tpu.matmul %144, %132, %cst_83 {dimension_numbers = #tpu.dot_dimension_numbers<[2], [1], [1], [2], [0, 0, 0, 1, 1, 2], [0], [0]>} : vector<2x8x8xf32>, vector<2x8x8xf32>, vector<2x8x8xf32> -> vector<2x8x8xf32>
    "tpu.trace_stop"() : () -> ()
    %146 = vector.shape_cast %145 : vector<2x8x8xf32> to vector<16x8xf32>
    %c3_84 = arith.constant 3 : index
    %c0_85 = arith.constant 0 : index
    %c0_86 = arith.constant 0 : index
    %147 = vector.load %arg7[%c3_84, %c0_85, %c0_86] : memref<4x8x32xf32, #tpu.memory_space<vmem>>, vector<1x8x32xf32>
    %148 = vector.shape_cast %147 : vector<1x8x32xf32> to vector<8x32xf32>
    %cst_87 = arith.constant dense<0.000000e+00> : vector<16x32xf32>
    %149 = tpu.matmul %146, %148, %cst_87 {dimension_numbers = #tpu.dot_dimension_numbers<[1], [0], [0], [1], [0, 0, 1, 1], [], []>} : vector<16x8xf32>, vector<8x32xf32>, vector<16x32xf32> -> vector<16x32xf32>
    %150 = arith.addf %120, %149 : vector<16x32xf32>
    %151 = arith.addf %1, %150 : vector<16x32xf32>
    %152 = vector.broadcast %3 : vector<16x1xf32> to vector<16x32xf32>
    %153 = arith.mulf %151, %152 : vector<16x32xf32>
    %c2_88 = arith.constant 2 : index
    %c0_89 = arith.constant 0 : index
    %154 = vector.load %arg5[%c2_88, %c0_89] : memref<4x32xf32, #tpu.memory_space<vmem>>, vector<1x32xf32>
    %c3_90 = arith.constant 3 : index
    %c0_91 = arith.constant 0 : index
    %155 = vector.load %arg5[%c3_90, %c0_91] : memref<4x32xf32, #tpu.memory_space<vmem>>, vector<1x32xf32>
    %cst_92 = arith.constant dense<0.000000e+00> : vector<16xf32>
    %156 = vector.multi_reduction <add>, %153, %cst_92 [1] : vector<16x32xf32> to vector<16xf32>
    %157 = vector.shape_cast %156 : vector<16xf32> to vector<16x1xf32>
    %cst_93 = arith.constant 3.200000e+01 : f32
    %158 = vector.broadcast %cst_93 : f32 to vector<16x1xf32>
    %159 = arith.divf %157, %158 : vector<16x1xf32>
    %160 = vector.broadcast %159 : vector<16x1xf32> to vector<16x32xf32>
    %161 = arith.subf %153, %160 : vector<16x32xf32>
    %162 = arith.mulf %161, %161 : vector<16x32xf32>
    %cst_94 = arith.constant dense<0.000000e+00> : vector<16xf32>
    %163 = vector.multi_reduction <add>, %162, %cst_94 [1] : vector<16x32xf32> to vector<16xf32>
    %164 = vector.shape_cast %163 : vector<16xf32> to vector<16x1xf32>
    %cst_95 = arith.constant 3.200000e+01 : f32
    %165 = vector.broadcast %cst_95 : f32 to vector<16x1xf32>
    %166 = arith.divf %164, %165 : vector<16x1xf32>
    %cst_96 = arith.constant 9.99999974E-6 : f32
    %167 = vector.broadcast %cst_96 : f32 to vector<16x1xf32>
    %168 = arith.addf %166, %167 : vector<16x1xf32>
    %169 = math.rsqrt %168 : vector<16x1xf32>
    %170 = vector.broadcast %169 : vector<16x1xf32> to vector<16x32xf32>
    %171 = arith.mulf %161, %170 : vector<16x32xf32>
    %172 = vector.broadcast %154 : vector<1x32xf32> to vector<16x32xf32>
    %173 = arith.mulf %171, %172 : vector<16x32xf32>
    %174 = vector.broadcast %155 : vector<1x32xf32> to vector<16x32xf32>
    %175 = arith.addf %173, %174 : vector<16x32xf32>
    %cst_97 = arith.constant 0.000000e+00 : f32
    %176 = vector.broadcast %cst_97 : f32 to vector<2x4x40xf32>
    %c0_98 = arith.constant 0 : index
    %c0_99 = arith.constant 0 : index
    %c0_100 = arith.constant 0 : index
    %177 = vector.load %arg13[%c0_98, %c0_99, %c0_100] : memref<2x16x40xf32, #tpu.memory_space<vmem>>, vector<2x4x40xf32>
    tpu.vector_store %arg13[%c0_98, %c0_99, %c0_100], %176 {strides = array<i32>} : memref<2x16x40xf32, #tpu.memory_space<vmem>>, vector<2x4x40xf32>,
    %c0_101 = arith.constant 0 : index
    %c12 = arith.constant 12 : index
    %c0_102 = arith.constant 0 : index
    %178 = vector.load %arg13[%c0_101, %c12, %c0_102] : memref<2x16x40xf32, #tpu.memory_space<vmem>>, vector<2x4x40xf32>
    tpu.vector_store %arg13[%c0_101, %c12, %c0_102], %176 {strides = array<i32>} : memref<2x16x40xf32, #tpu.memory_space<vmem>>, vector<2x4x40xf32>,
    %179 = vector.shape_cast %175 : vector<16x32xf32> to vector<2x8x32xf32>
    %c0_103 = arith.constant 0 : index
    %c4_104 = arith.constant 4 : index
    %c0_105 = arith.constant 0 : index
    %180 = vector.load %arg13[%c0_103, %c4_104, %c0_105] : memref<2x16x40xf32, #tpu.memory_space<vmem>>, vector<2x8x32xf32>
    tpu.vector_store %arg13[%c0_103, %c4_104, %c0_105], %179 {strides = array<i32>} : memref<2x16x40xf32, #tpu.memory_space<vmem>>, vector<2x8x32xf32>,
    %181 = vector.extract_strided_slice %4 {offsets = [0, 0], sizes = [2, 8], strides = [1, 1]} : vector<2x9xf32> to vector<2x8xf32>
    %182 = vector.shape_cast %181 : vector<2x8xf32> to vector<2x1x8xf32>
    %183 = vector.shape_cast %182 : vector<2x1x8xf32> to vector<2x1x8xf32>
    %184 = vector.broadcast %183 : vector<2x1x8xf32> to vector<2x8x8xf32>
    %c0_106 = arith.constant 0 : index
    %c4_107 = arith.constant 4 : index
    %c32 = arith.constant 32 : index
    %185 = vector.load %arg13[%c0_106, %c4_107, %c32] : memref<2x16x40xf32, #tpu.memory_space<vmem>>, vector<2x8x8xf32>
    tpu.vector_store %arg13[%c0_106, %c4_107, %c32], %184 {strides = array<i32>} : memref<2x16x40xf32, #tpu.memory_space<vmem>>, vector<2x8x8xf32>,
    %c0_108 = arith.constant 0 : index
    %c0_109 = arith.constant 0 : index
    %c0_110 = arith.constant 0 : index
    %186 = vector.load %arg13[%c0_108, %c0_109, %c0_110] : memref<2x16x40xf32, #tpu.memory_space<vmem>>, vector<2x8x40xf32>
    %187 = vector.shape_cast %186 : vector<2x8x40xf32> to vector<16x40xf32>
    %c0_111 = arith.constant 0 : index
    %c0_112 = arith.constant 0 : index
    %c0_113 = arith.constant 0 : index
    %188 = vector.load %arg8[%c0_111, %c0_112, %c0_113] : memref<9x40x128xf32, #tpu.memory_space<vmem>>, vector<1x40x128xf32>
    %189 = vector.shape_cast %188 : vector<1x40x128xf32> to vector<40x128xf32>
    %cst_114 = arith.constant dense<0.000000e+00> : vector<16x128xf32>
    %190 = tpu.matmul %187, %189, %cst_114 {dimension_numbers = #tpu.dot_dimension_numbers<[1], [0], [0], [1], [0, 0, 1, 1], [], []>} : vector<16x40xf32>, vector<40x128xf32>, vector<16x128xf32> -> vector<16x128xf32>
    %c0_115 = arith.constant 0 : index
    %c1_116 = arith.constant 1 : index
    %c0_117 = arith.constant 0 : index
    %191 = vector.load %arg13[%c0_115, %c1_116, %c0_117] : memref<2x16x40xf32, #tpu.memory_space<vmem>>, vector<2x8x40xf32>
    %192 = vector.shape_cast %191 : vector<2x8x40xf32> to vector<16x40xf32>
    %c1_118 = arith.constant 1 : index
    %c0_119 = arith.constant 0 : index
    %c0_120 = arith.constant 0 : index
    %193 = vector.load %arg8[%c1_118, %c0_119, %c0_120] : memref<9x40x128xf32, #tpu.memory_space<vmem>>, vector<1x40x128xf32>
    %194 = vector.shape_cast %193 : vector<1x40x128xf32> to vector<40x128xf32>
    %cst_121 = arith.constant dense<0.000000e+00> : vector<16x128xf32>
    %195 = tpu.matmul %192, %194, %cst_121 {dimension_numbers = #tpu.dot_dimension_numbers<[1], [0], [0], [1], [0, 0, 1, 1], [], []>} : vector<16x40xf32>, vector<40x128xf32>, vector<16x128xf32> -> vector<16x128xf32>
    %196 = arith.addf %190, %195 : vector<16x128xf32>
    %c0_122 = arith.constant 0 : index
    %c2_123 = arith.constant 2 : index
    %c0_124 = arith.constant 0 : index
    %197 = vector.load %arg13[%c0_122, %c2_123, %c0_124] : memref<2x16x40xf32, #tpu.memory_space<vmem>>, vector<2x8x40xf32>
    %198 = vector.shape_cast %197 : vector<2x8x40xf32> to vector<16x40xf32>
    %c2_125 = arith.constant 2 : index
    %c0_126 = arith.constant 0 : index
    %c0_127 = arith.constant 0 : index
    %199 = vector.load %arg8[%c2_125, %c0_126, %c0_127] : memref<9x40x128xf32, #tpu.memory_space<vmem>>, vector<1x40x128xf32>
    %200 = vector.shape_cast %199 : vector<1x40x128xf32> to vector<40x128xf32>
    %cst_128 = arith.constant dense<0.000000e+00> : vector<16x128xf32>
    %201 = tpu.matmul %198, %200, %cst_128 {dimension_numbers = #tpu.dot_dimension_numbers<[1], [0], [0], [1], [0, 0, 1, 1], [], []>} : vector<16x40xf32>, vector<40x128xf32>, vector<16x128xf32> -> vector<16x128xf32>
    %202 = arith.addf %196, %201 : vector<16x128xf32>
    %c0_129 = arith.constant 0 : index
    %c3_130 = arith.constant 3 : index
    %c0_131 = arith.constant 0 : index
    %203 = vector.load %arg13[%c0_129, %c3_130, %c0_131] : memref<2x16x40xf32, #tpu.memory_space<vmem>>, vector<2x8x40xf32>
    %204 = vector.shape_cast %203 : vector<2x8x40xf32> to vector<16x40xf32>
    %c3_132 = arith.constant 3 : index
    %c0_133 = arith.constant 0 : index
    %c0_134 = arith.constant 0 : index
    %205 = vector.load %arg8[%c3_132, %c0_133, %c0_134] : memref<9x40x128xf32, #tpu.memory_space<vmem>>, vector<1x40x128xf32>
    %206 = vector.shape_cast %205 : vector<1x40x128xf32> to vector<40x128xf32>
    %cst_135 = arith.constant dense<0.000000e+00> : vector<16x128xf32>
    %207 = tpu.matmul %204, %206, %cst_135 {dimension_numbers = #tpu.dot_dimension_numbers<[1], [0], [0], [1], [0, 0, 1, 1], [], []>} : vector<16x40xf32>, vector<40x128xf32>, vector<16x128xf32> -> vector<16x128xf32>
    %208 = arith.addf %202, %207 : vector<16x128xf32>
    %c0_136 = arith.constant 0 : index
    %c4_137 = arith.constant 4 : index
    %c0_138 = arith.constant 0 : index
    %209 = vector.load %arg13[%c0_136, %c4_137, %c0_138] : memref<2x16x40xf32, #tpu.memory_space<vmem>>, vector<2x8x40xf32>
    %210 = vector.shape_cast %209 : vector<2x8x40xf32> to vector<16x40xf32>
    %c4_139 = arith.constant 4 : index
    %c0_140 = arith.constant 0 : index
    %c0_141 = arith.constant 0 : index
    %211 = vector.load %arg8[%c4_139, %c0_140, %c0_141] : memref<9x40x128xf32, #tpu.memory_space<vmem>>, vector<1x40x128xf32>
    %212 = vector.shape_cast %211 : vector<1x40x128xf32> to vector<40x128xf32>
    %cst_142 = arith.constant dense<0.000000e+00> : vector<16x128xf32>
    %213 = tpu.matmul %210, %212, %cst_142 {dimension_numbers = #tpu.dot_dimension_numbers<[1], [0], [0], [1], [0, 0, 1, 1], [], []>} : vector<16x40xf32>, vector<40x128xf32>, vector<16x128xf32> -> vector<16x128xf32>
    %214 = arith.addf %208, %213 : vector<16x128xf32>
    %c0_143 = arith.constant 0 : index
    %c5_144 = arith.constant 5 : index
    %c0_145 = arith.constant 0 : index
    %215 = vector.load %arg13[%c0_143, %c5_144, %c0_145] : memref<2x16x40xf32, #tpu.memory_space<vmem>>, vector<2x8x40xf32>
    %216 = vector.shape_cast %215 : vector<2x8x40xf32> to vector<16x40xf32>
    %c5_146 = arith.constant 5 : index
    %c0_147 = arith.constant 0 : index
    %c0_148 = arith.constant 0 : index
    %217 = vector.load %arg8[%c5_146, %c0_147, %c0_148] : memref<9x40x128xf32, #tpu.memory_space<vmem>>, vector<1x40x128xf32>
    %218 = vector.shape_cast %217 : vector<1x40x128xf32> to vector<40x128xf32>
    %cst_149 = arith.constant dense<0.000000e+00> : vector<16x128xf32>
    %219 = tpu.matmul %216, %218, %cst_149 {dimension_numbers = #tpu.dot_dimension_numbers<[1], [0], [0], [1], [0, 0, 1, 1], [], []>} : vector<16x40xf32>, vector<40x128xf32>, vector<16x128xf32> -> vector<16x128xf32>
    %220 = arith.addf %214, %219 : vector<16x128xf32>
    %c0_150 = arith.constant 0 : index
    %c6_151 = arith.constant 6 : index
    %c0_152 = arith.constant 0 : index
    %221 = vector.load %arg13[%c0_150, %c6_151, %c0_152] : memref<2x16x40xf32, #tpu.memory_space<vmem>>, vector<2x8x40xf32>
    %222 = vector.shape_cast %221 : vector<2x8x40xf32> to vector<16x40xf32>
    %c6_153 = arith.constant 6 : index
    %c0_154 = arith.constant 0 : index
    %c0_155 = arith.constant 0 : index
    %223 = vector.load %arg8[%c6_153, %c0_154, %c0_155] : memref<9x40x128xf32, #tpu.memory_space<vmem>>, vector<1x40x128xf32>
    %224 = vector.shape_cast %223 : vector<1x40x128xf32> to vector<40x128xf32>
    %cst_156 = arith.constant dense<0.000000e+00> : vector<16x128xf32>
    %225 = tpu.matmul %222, %224, %cst_156 {dimension_numbers = #tpu.dot_dimension_numbers<[1], [0], [0], [1], [0, 0, 1, 1], [], []>} : vector<16x40xf32>, vector<40x128xf32>, vector<16x128xf32> -> vector<16x128xf32>
    %226 = arith.addf %220, %225 : vector<16x128xf32>
    %c0_157 = arith.constant 0 : index
    %c7_158 = arith.constant 7 : index
    %c0_159 = arith.constant 0 : index
    %227 = vector.load %arg13[%c0_157, %c7_158, %c0_159] : memref<2x16x40xf32, #tpu.memory_space<vmem>>, vector<2x8x40xf32>
    %228 = vector.shape_cast %227 : vector<2x8x40xf32> to vector<16x40xf32>
    %c7_160 = arith.constant 7 : index
    %c0_161 = arith.constant 0 : index
    %c0_162 = arith.constant 0 : index
    %229 = vector.load %arg8[%c7_160, %c0_161, %c0_162] : memref<9x40x128xf32, #tpu.memory_space<vmem>>, vector<1x40x128xf32>
    %230 = vector.shape_cast %229 : vector<1x40x128xf32> to vector<40x128xf32>
    %cst_163 = arith.constant dense<0.000000e+00> : vector<16x128xf32>
    %231 = tpu.matmul %228, %230, %cst_163 {dimension_numbers = #tpu.dot_dimension_numbers<[1], [0], [0], [1], [0, 0, 1, 1], [], []>} : vector<16x40xf32>, vector<40x128xf32>, vector<16x128xf32> -> vector<16x128xf32>
    %232 = arith.addf %226, %231 : vector<16x128xf32>
    %c0_164 = arith.constant 0 : index
    %c8_165 = arith.constant 8 : index
    %c0_166 = arith.constant 0 : index
    %233 = vector.load %arg13[%c0_164, %c8_165, %c0_166] : memref<2x16x40xf32, #tpu.memory_space<vmem>>, vector<2x8x40xf32>
    %234 = vector.shape_cast %233 : vector<2x8x40xf32> to vector<16x40xf32>
    %c8_167 = arith.constant 8 : index
    %c0_168 = arith.constant 0 : index
    %c0_169 = arith.constant 0 : index
    %235 = vector.load %arg8[%c8_167, %c0_168, %c0_169] : memref<9x40x128xf32, #tpu.memory_space<vmem>>, vector<1x40x128xf32>
    %236 = vector.shape_cast %235 : vector<1x40x128xf32> to vector<40x128xf32>
    %cst_170 = arith.constant dense<0.000000e+00> : vector<16x128xf32>
    %237 = tpu.matmul %234, %236, %cst_170 {dimension_numbers = #tpu.dot_dimension_numbers<[1], [0], [0], [1], [0, 0, 1, 1], [], []>} : vector<16x40xf32>, vector<40x128xf32>, vector<16x128xf32> -> vector<16x128xf32>
    %238 = arith.addf %232, %237 : vector<16x128xf32>
    %c0_171 = arith.constant 0 : index
    %c0_172 = arith.constant 0 : index
    %239 = vector.load %arg9[%c0_171, %c0_172] : memref<1x128xf32, #tpu.memory_space<vmem>>, vector<1x128xf32>
    %240 = vector.broadcast %239 : vector<1x128xf32> to vector<16x128xf32>
    %241 = arith.addf %238, %240 : vector<16x128xf32>
    %cst_173 = arith.constant 5.000000e-01 : f32
    %242 = vector.broadcast %cst_173 : f32 to vector<16x128xf32>
    %243 = arith.mulf %242, %241 : vector<16x128xf32>
    %cst_174 = arith.constant 4.471500e-02 : f32
    %244 = vector.broadcast %cst_174 : f32 to vector<16x128xf32>
    %245 = arith.mulf %244, %241 : vector<16x128xf32>
    %246 = arith.mulf %245, %241 : vector<16x128xf32>
    %247 = arith.mulf %246, %241 : vector<16x128xf32>
    %248 = arith.addf %241, %247 : vector<16x128xf32>
    %cst_175 = arith.constant 0.797884583 : f32
    %249 = vector.broadcast %cst_175 : f32 to vector<16x128xf32>
    %250 = arith.mulf %249, %248 : vector<16x128xf32>
    %251 = math.tanh %250 : vector<16x128xf32>
    %cst_176 = arith.constant 1.000000e+00 : f32
    %252 = vector.broadcast %cst_176 : f32 to vector<16x128xf32>
    %253 = arith.addf %252, %251 : vector<16x128xf32>
    %254 = arith.mulf %243, %253 : vector<16x128xf32>
    %c0_177 = arith.constant 0 : index
    %c0_178 = arith.constant 0 : index
    %255 = vector.load %arg11[%c0_177, %c0_178] : memref<128x32xf32, #tpu.memory_space<vmem>>, vector<128x32xf32>
    %cst_179 = arith.constant dense<0.000000e+00> : vector<16x32xf32>
    %256 = tpu.matmul %254, %255, %cst_179 {dimension_numbers = #tpu.dot_dimension_numbers<[1], [0], [0], [1], [0, 0, 1, 1], [], []>} : vector<16x128xf32>, vector<128x32xf32>, vector<16x32xf32> -> vector<16x32xf32>
    %c0_180 = arith.constant 0 : index
    %c0_181 = arith.constant 0 : index
    %257 = vector.load %arg10[%c0_180, %c0_181] : memref<9x32xf32, #tpu.memory_space<vmem>>, vector<9x32xf32>
    %cst_182 = arith.constant dense<0.000000e+00> : vector<2x32xf32>
    %258 = tpu.matmul %4, %257, %cst_182 {dimension_numbers = #tpu.dot_dimension_numbers<[1], [0], [0], [1], [0, 0, 1, 1], [], []>} : vector<2x9xf32>, vector<9x32xf32>, vector<2x32xf32> -> vector<2x32xf32>
    %259 = arith.addf %153, %256 : vector<16x32xf32>
    %260 = vector.shape_cast %259 : vector<16x32xf32> to vector<2x8x32xf32>
    %261 = vector.shape_cast %258 : vector<2x32xf32> to vector<2x1x32xf32>
    %262 = vector.broadcast %261 : vector<2x1x32xf32> to vector<2x8x32xf32>
    %263 = arith.addf %260, %262 : vector<2x8x32xf32>
    %264 = vector.broadcast %2 : vector<2x8x1xf32> to vector<2x8x32xf32>
    %265 = arith.mulf %263, %264 : vector<2x8x32xf32>
    %c0_183 = arith.constant 0 : index
    %c0_184 = arith.constant 0 : index
    %c0_185 = arith.constant 0 : index
    %266 = vector.load %arg12[%c0_183, %c0_184, %c0_185] : memref<2x8x32xf32, #tpu.memory_space<vmem>>, vector<2x8x32xf32>
    tpu.vector_store %arg12[%c0_183, %c0_184, %c0_185], %265 {strides = array<i32>} : memref<2x8x32xf32, #tpu.memory_space<vmem>>, vector<2x8x32xf32>,
    return
  }
  func.func @transform_0(%arg0: i32) -> (i32, i32, i32) {
    %c0_i32 = arith.constant 0 : i32
    %c0_i32_0 = arith.constant 0 : i32
    %c0_i32_1 = arith.constant 0 : i32
    return %arg0, %c0_i32, %c0_i32_0 : i32, i32, i32
  }
  func.func @transform_1(%arg0: i32) -> (i32, i32, i32) {
    %c0_i32 = arith.constant 0 : i32
    %c0_i32_0 = arith.constant 0 : i32
    %c0_i32_1 = arith.constant 0 : i32
    return %arg0, %c0_i32, %c0_i32_0 : i32, i32, i32
  }
  func.func @transform_2(%arg0: i32) -> (i32, i32, i32) {
    %c0_i32 = arith.constant 0 : i32
    %c0_i32_0 = arith.constant 0 : i32
    %c0_i32_1 = arith.constant 0 : i32
    return %arg0, %c0_i32, %c0_i32_0 : i32, i32, i32
  }
  func.func @transform_3(%arg0: i32) -> (i32, i32) {
    %c0_i32 = arith.constant 0 : i32
    %c0_i32_0 = arith.constant 0 : i32
    return %arg0, %c0_i32 : i32, i32
  }
  func.func @transform_4(%arg0: i32) -> (i32, i32) {
    %c0_i32 = arith.constant 0 : i32
    %c0_i32_0 = arith.constant 0 : i32
    %c0_i32_1 = arith.constant 0 : i32
    return %c0_i32, %c0_i32_0 : i32, i32
  }
  func.func @transform_5(%arg0: i32) -> (i32, i32, i32) {
    %c0_i32 = arith.constant 0 : i32
    %c0_i32_0 = arith.constant 0 : i32
    %c0_i32_1 = arith.constant 0 : i32
    %c0_i32_2 = arith.constant 0 : i32
    return %c0_i32, %c0_i32_0, %c0_i32_1 : i32, i32, i32
  }
  func.func @transform_6(%arg0: i32) -> (i32, i32, i32) {
    %c0_i32 = arith.constant 0 : i32
    %c0_i32_0 = arith.constant 0 : i32
    %c0_i32_1 = arith.constant 0 : i32
    %c0_i32_2 = arith.constant 0 : i32
    return %c0_i32, %c0_i32_0, %c0_i32_1 : i32, i32, i32
  }
  func.func @transform_7(%arg0: i32) -> (i32, i32, i32) {
    %c0_i32 = arith.constant 0 : i32
    %c0_i32_0 = arith.constant 0 : i32
    %c0_i32_1 = arith.constant 0 : i32
    %c0_i32_2 = arith.constant 0 : i32
    return %c0_i32, %c0_i32_0, %c0_i32_1 : i32, i32, i32
  }
  func.func @transform_8(%arg0: i32) -> (i32, i32) {
    %c0_i32 = arith.constant 0 : i32
    %c0_i32_0 = arith.constant 0 : i32
    %c0_i32_1 = arith.constant 0 : i32
    return %c0_i32, %c0_i32_0 : i32, i32
  }
  func.func @transform_9(%arg0: i32) -> (i32, i32) {
    %c0_i32 = arith.constant 0 : i32
    %c0_i32_0 = arith.constant 0 : i32
    %c0_i32_1 = arith.constant 0 : i32
    return %c0_i32, %c0_i32_0 : i32, i32
  }
  func.func @transform_10(%arg0: i32) -> (i32, i32) {
    %c0_i32 = arith.constant 0 : i32
    %c0_i32_0 = arith.constant 0 : i32
    %c0_i32_1 = arith.constant 0 : i32
    return %c0_i32, %c0_i32_0 : i32, i32
  }
  func.func @transform_11(%arg0: i32) -> (i32, i32, i32) {
    %c0_i32 = arith.constant 0 : i32
    %c0_i32_0 = arith.constant 0 : i32
    %c0_i32_1 = arith.constant 0 : i32
    return %arg0, %c0_i32, %c0_i32_0 : i32, i32, i32
  }
}

</mosaic_0001>

<bundles_post_ra>
// kernel: tpu_custom_call.1
= control target key start
LH: loop header
LB: loop body
LE: loop exit
PB: predicated region body
PF: predicated region fallthrough
CT: control target
= control target key end

     0   :  { %vm46_vm0 = vcmask 261120   ;;  %s2546_s0 = inlined_call_operand.vmem [shape: f32[2,8,32], index: 0, kind: input, shape index: {}]   ;;  %s2547_s1 = inlined_call_operand.vmem [shape: f32[2,1,8], index: 1, kind: input, shape index: {}]   ;;  %s2548_s2 = inlined_call_operand.vmem [shape: f32[2,8,1], index: 2, kind: input, shape index: {}]   ;;  %s2549_s3 = inlined_call_operand.vmem [shape: f32[2,9], index: 3, kind: input, shape index: {}]   ;;  %s2550_s4 = inlined_call_operand.vmem [shape: f32[4,32], index: 4, kind: input, shape index: {}]   ;;  %s2551_s5 = inlined_call_operand.vmem [shape: f32[12,32,8], index: 5, kind: input, shape index: {}]   ;;  %s2552_s6 = inlined_call_operand.vmem [shape: f32[4,8,32], index: 6, kind: input, shape index: {}]   ;;  %s2553_s7 = inlined_call_operand.vmem [shape: f32[9,40,128], index: 7, kind: input, shape index: {}]   ;;  %s2554_s8 = inlined_call_operand.vmem [shape: f32[1,128], index: 8, kind: input, shape index: {}]   ;;  %s2555_s9 = inlined_call_operand.vmem [shape: f32[9,32], index: 9, kind: input, shape index: {}]   ;;  %s2556_s10 = inlined_call_operand.vmem [shape: f32[128,32], index: 10, kind: input, shape index: {}]   ;;  %s2557_s11 = inlined_call_operand.hbm [shape: f32[2,8,32], index: 11, kind: output, shape index: {}]  }
   0x1   :  { %v1939_v0 = vld [vmem:[%s2546_s0] sm:$0xff] }
   0x2   :  { %v47_v1 = vsel %vm46_vm0, %v1939_v0, 0.0 }
   0x3   :  { %48 = vadd.xlane.f32.xlu0 %v47_v1 }
   0x4   :  { %16 = vsyncpa [#allocation4], 0  ;;  %v1946_v2 = vld [vmem:[%s2546_s0 + $0x8] sm:$0xff]  ;;  %v1869_v4 = vmov 32.0   ;;  %v115_v21 = vld [vmem:[%s2551_s5 + $0x18] sm:$0xff]  ;;  %vm201_vm8 = vcmask 64512  }
   0x5   :  { %v50_v3 = vsel %vm46_vm0, %v1946_v2, 0.0  ;;  %1797 = vrcp.f32 %v1869_v4  ;;  %v1623_v22 = vld [vmem:[%s2551_s5 + $0x98] sm:$0xff]  ;;  %134 = vmatpush.msra.mxu0 %v115_v21  ;;  %v114_v24 = vld [vmem:[%s2551_s5 + $0x10] sm:$0xff]  ;;  %v113_v27 = vld [vmem:[%s2551_s5 + $0x8] sm:$0xff]  ;;  %s1871_s12 = smov 32   ;;  %vm1127_vm9 = vcmask 322560  }
   0x6   :  { %v1629_v23 = vld [vmem:[%s2551_s5 + $0x118] sm:$0xff]  ;;  %162 = vmatpush.msra.mxu1 %v1623_v22  ;;  %v1622_v25 = vld [vmem:[%s2551_s5 + $0x90] sm:$0xff]  ;;  %v1621_v28 = vld [vmem:[%s2551_s5 + $0x88] sm:$0xff]  ;;  %vm1144_vm14 = vcmask 326912   ;;  %s1606_s16 = sshll.u32 %s2557_s11, 4  ;;  %s1874_s17 = smov 128   ;;  %s1607_s16 = int_to_ptr.hbm [resolvable:$true] %s1606_s16 }
   0x7   :  { %190 = vmatpush.msra.mxu2 %v1629_v23  ;;  %v1628_v26 = vld [vmem:[%s2551_s5 + $0x110] sm:$0xff]  ;;  %135 = vmatpush.msra.mxu0 %v114_v24  ;;  %v1627_v29 = vld [vmem:[%s2551_s5 + $0x108] sm:$0xff]  ;;  %v112_v30 = vld [vmem:[%s2551_s5] sm:$0xff]  ;;  %s1875_s18 = smov 8  }
   0x8   :  { %163 = vmatpush.msra.mxu1 %v1622_v25  ;;  %v1620_v31 = vld [vmem:[%s2551_s5 + $0x80] sm:$0xff]  ;;  %v1641_v36 = vld [vmem:[%s2551_s5 + $0x38] sm:$0xff]  ;;  %v1640_v38 = vld [vmem:[%s2551_s5 + $0x30] sm:$0xff] }
   0x9   :  { %191 = vmatpush.msra.mxu2 %v1628_v26  ;;  %136 = vmatpush.msra.mxu0 %v113_v27  ;;  %v1626_v32 = vld [vmem:[%s2551_s5 + $0x100] sm:$0xff]  ;;  %v1647_v37 = vld [vmem:[%s2551_s5 + $0xb8] sm:$0xff]  ;;  %v1646_v39 = vld [vmem:[%s2551_s5 + $0xb0] sm:$0xff] }
   0xa   :  { %164 = vmatpush.msra.mxu1 %v1621_v28  ;;  %v1639_v41 = vld [vmem:[%s2551_s5 + $0x28] sm:$0xff]  ;;  %v1638_v44 = vld [vmem:[%s2551_s5 + $0x20] sm:$0xff] }
   0xb   :  { %51 = vadd.xlane.f32.xlu0 %v50_v3  ;;  %v1798_v5 = vpop.eup %1797  ;;  %192 = vmatpush.msra.mxu2 %v1627_v29  ;;  %v1645_v42 = vld [vmem:[%s2551_s5 + $0xa8] sm:$0xff]  ;;  %v1644_v45 = vld [vmem:[%s2551_s5 + $0xa0] sm:$0xff] }
   0xc   :  { %v54_v6 = vmul.f32 32.0, %v1798_v5  ;;  %vm58_vm1 = vweird.f32 %v1798_v5  ;;  %137 = vmatpush.msra.mxu0 %v112_v30  ;;  %165 = vmatpush.msra.mxu1 %v1620_v31  ;;  %v1790_v55 = vld [vmem:[%s2550_s4] ss:$0 sm:$0xff]  ;;  %v1791_v58 = vld [vmem:[%s2550_s4 + $0x1] ss:$0 sm:$0xff] }
   0xd   :  { %193 = vmatpush.msra.mxu2 %v1626_v32 }
   0xe   :  { %v55_v7 = vsub.f32 1.0, %v54_v6  ;;  %340 = vmatpush.msrb.mxu1 %v1641_v36  ;;  %v1650_v36 = vld [vmem:[%s2551_s5 + $0x120] sm:$0xff] }
   0xf   :  { %368 = vmatpush.msrb.mxu2 %v1647_v37 }
  0x10   :  { %v56_v8 = vmul.f32 %v1798_v5, %v55_v7  ;;  %341 = vmatpush.msrb.mxu1 %v1640_v38 }
  0x11   :  { %369 = vmatpush.msrb.mxu2 %v1646_v39 }
  0x12   :  { %v57_v9 = vadd.f32 %v1798_v5, %v56_v8  ;;  %342 = vmatpush.msrb.mxu1 %v1639_v41 }
  0x13   :  { %370 = vmatpush.msrb.mxu2 %v1645_v42 }
  0x14   :  { %v1950_v10 = vsel %vm58_vm1, %v1798_v5, %v57_v9  ;;  %343 = vmatpush.msrb.mxu1 %v1638_v44 }
  0x15   :  { %371 = vmatpush.msrb.mxu2 %v1644_v45 }
  0x76   :  { %v49_v11 = vpop.xlane.xlu0 %48 }
  0x77   :  { %v60_v12 = vmul.f32 %v1950_v10, %v49_v11 }
  0x79   :  { %v1954_v13 = vsub.f32 %v1939_v0, %v60_v12 }
  0x7b   :  { %v64_v14 = vmul.f32 %v1954_v13, %v1954_v13 }
  0x7d   :  { %v66_v15 = vsel %vm46_vm0, %v64_v14, 0.0 }
  0x7e   :  { %67 = vadd.xlane.f32.xlu1 %v66_v15  ;;  %v52_v16 = vpop.xlane.xlu0 %51  ;;  %v2068_v15 = vld [vmem:[%s2547_s1] ss:$0 sm:$0xff] }
  0x7f   :  { %v61_v17 = vmul.f32 %v1950_v10, %v52_v16 }
  0x81   :  { %v1961_v18 = vsub.f32 %v1946_v2, %v61_v17 }
  0x83   :  { %v65_v19 = vmul.f32 %v1961_v18, %v1961_v18 }
  0x85   :  { %v69_v20 = vsel %vm46_vm0, %v65_v19, 0.0  ;;  %v2075_v19 = vld [vmem:[%s2547_s1 + $0x1] ss:$0 sm:$0xff] }
  0x86   :  { %70 = vadd.xlane.f32.xlu1 %v69_v20 }
  0xf1   :  { %v68_v33 = vpop.xlane.xlu1 %67 }
  0xf2   :  { %v72_v34 = vmul.f32 %v68_v33, %v1950_v10  ;;  %v1653_v33 = vld [vmem:[%s2551_s5 + $0x138] sm:$0xff] }
  0xf4   :  { %v74_v35 = vadd.f32 1e-05, %v72_v34  ;;  %v1652_v34 = vld [vmem:[%s2551_s5 + $0x130] sm:$0xff] }
  0xf6   :  { %1799 = vrsqrt.f32 %v74_v35  ;;  %vm82_vm3 = vweird.f32 %v74_v35 }
  0xf9   :  { %v71_v40 = vpop.xlane.xlu1 %70 }
  0xfa   :  { %v73_v43 = vmul.f32 %v71_v40, %v1950_v10 }
  0xfc   :  { %v1800_v46 = vpop.eup %1799  ;;  %v75_v47 = vadd.f32 1e-05, %v73_v43 }
  0xfd   :  { %v77_v48 = vmul.f32 %v1800_v46, %v74_v35  ;;  %vm83_vm2 = vweird.f32 %v1800_v46  ;;  %v1651_v35 = vld [vmem:[%s2551_s5 + $0x128] sm:$0xff] }
  0xfe   :  { %1801 = vrsqrt.f32 %v75_v47  ;;  %vm84_vm4 = vmor %vm82_vm3, %vm83_vm2  ;;  %vm92_vm6 = vweird.f32 %v75_v47  ;;  %vm1162_vm2 = vcmask 326656   ;;  %vm1562_vm3 = vcmask 1040384  }
  0xff   :  { %v78_v49 = vmul.f32 %v1800_v46, %v77_v48 }
 0x101   :  { %v79_v50 = vmul.f32 0.5, %v78_v49 }
 0x103   :  { %v80_v51 = vsub.f32 1.5, %v79_v50 }
 0x104   :  { %v1802_v52 = vpop.eup %1801 }
 0x105   :  { %v81_v53 = vmul.f32 %v1800_v46, %v80_v51  ;;  %v87_v54 = vmul.f32 %v1802_v52, %v75_v47  ;;  %vm93_vm5 = vweird.f32 %v1802_v52 }
 0x106   :  { %vm94_vm7 = vmor %vm92_vm6, %vm93_vm5 }
 0x107   :  { %v85_v56 = vsel %vm84_vm4, %v1800_v46, %v81_v53  ;;  %v88_v57 = vmul.f32 %v1802_v52, %v87_v54  ;;  %v322_v46 = vld [vmem:[%s2552_s6] sm:$0xff]  ;;  %vm1559_vm4 = vcmask 72704  }
 0x108   :  { %v96_v59 = vmul.f32 %v85_v56, %v1954_v13 }
 0x109   :  { %v89_v60 = vmul.f32 0.5, %v88_v57 }
 0x10a   :  { %v99_v61 = vmul.f32 %v1790_v55, %v96_v59 }
 0x10b   :  { %v90_v62 = vsub.f32 1.5, %v89_v60 }
 0x10c   :  { %v2035_v63 = vadd.f32 %v1791_v58, %v99_v61 }
 0x10d   :  { %v91_v1 = vmul.f32 %v1802_v52, %v90_v62 }
 0x10e   :  { %1618 = vmatmul.msk.f32.vlgmr.msra.gmra.mxu0 %vm46_vm0, %v2035_v63  ;;  %1624 = vmatmul.msk.f32.vlgmr.msra.gmra.mxu1 %vm46_vm0, %v2035_v63 }
 0x10f   :  { %v95_v3 = vsel %vm94_vm7, %v1802_v52, %v91_v1  ;;  %1630 = vmatmul.msk.f32.vlgmr.msra.gmra.mxu2 %vm46_vm0, %v2035_v63 }
 0x110   :  { %v97_v4 = vmul.f32 %v95_v3, %v1961_v18 }
 0x112   :  { %v100_v5 = vmul.f32 %v1790_v55, %v97_v4 }
 0x114   :  { %v2044_v6 = vadd.f32 %v1791_v58, %v100_v5 }
 0x116   :  { %1619 = vmatmul.msk.f32.gmra.mxu0 %vm46_vm0, %v2044_v6  ;;  %1625 = vmatmul.msk.f32.gmra.mxu1 %vm46_vm0, %v2044_v6 }
 0x117   :  { %1631 = vmatmul.msk.f32.gmra.mxu2 %vm46_vm0, %v2044_v6 }
 0x11e   :  { %1642 = vmatmul.msk.f32.vlgmr.msrb.gmra.mxu1 %vm46_vm0, %v2035_v63 }
 0x11f   :  { %1648 = vmatmul.msk.f32.vlgmr.msrb.gmra.mxu2 %vm46_vm0, %v2035_v63 }
 0x126   :  { %1643 = vmatmul.msk.f32.gmra.mxu1 %vm46_vm0, %v2044_v6 }
 0x127   :  { %1649 = vmatmul.msk.f32.gmra.mxu2 %vm46_vm0, %v2044_v6 }
 0x18b   :  { %v167_v7 = vpop.f32.mrf.mxu1  ;;  %v139_v8 = vpop.f32.mrf.mxu0 }
 0x18c   :  { %1632 = vmatpush.xpose.msk.msrb.mxu0 %vm201_vm8, %v167_v7  ;;  %v1670_v7 = vld [vmem:[%s2551_s5 + $0x58] sm:$0xff] }
 0x18f   :  { %1633 = vmatmul.msk.f32.vlgmr.msrb.gmra.mxu0 %vm201_vm8, %v139_v8  ;;  %v1669_v8 = vld [vmem:[%s2551_s5 + $0x50] sm:$0xff] }
 0x192   :  { %v195_v9 = vpop.f32.mrf.mxu2 }
 0x193   :  { %v170_v11 = vpop.f32.mrf.mxu1  ;;  %v142_v12 = vpop.f32.mrf.mxu0 }
 0x194   :  { %1634 = vmatpush.xpose.msk.msra.mxu3 %vm201_vm8, %v170_v11  ;;  %v1667_v11 = vld [vmem:[%s2551_s5 + $0x40] sm:$0xff] }
 0x197   :  { %1635 = vmatmul.msk.f32.vlgmr.msra.gmra.mxu3 %vm201_vm8, %v142_v12  ;;  %v1676_v12 = vld [vmem:[%s2551_s5 + $0xd8] sm:$0xff] }
 0x198   :  { %294 = vmatpush.msrb.mxu3 %v195_v9  ;;  %v1668_v9 = vld [vmem:[%s2551_s5 + $0x48] sm:$0xff] }
 0x19a   :  { %v198_v13 = vpop.f32.mrf.mxu2  ;;  %396 = vmatpush.msra.mxu3 %v1653_v33  ;;  %v1700_v33 = vld [vmem:[%s2551_s5 + $0xe0] sm:$0xff] }
 0x19b   :  { %317 = vmatpush.msra.mxu0 %v198_v13  ;;  %v345_v44 = vpop.f32.mrf.mxu1  ;;  %v1675_v13 = vld [vmem:[%s2551_s5 + $0xd0] sm:$0xff] }
 0x19c   :  { %397 = vmatpush.msra.mxu3 %v1652_v34 }
 0x19e   :  { %398 = vmatpush.msra.mxu3 %v1651_v35 }
 0x1a0   :  { %399 = vmatpush.msra.mxu3 %v1650_v36 }
 0x1a2   :  { %v373_v14 = vpop.f32.mrf.mxu2 }
 0x1a3   :  { %1656 = vmatpush.xpose.msk.msrb.mxu0 %vm201_vm8, %v373_v14  ;;  %v348_v45 = vpop.f32.mrf.mxu1  ;;  %v1674_v14 = vld [vmem:[%s2551_s5 + $0xc8] sm:$0xff] }
 0x1aa   :  { %v376_v43 = vpop.f32.mrf.mxu2 }
 0x20c   :  { %v225_v16 = vpop.f32.mrf.mxu0 }
 0x20d   :  { %v226_v17 = vadd.f32 %v2068_v15, %v225_v16  ;;  %v1673_v16 = vld [vmem:[%s2551_s5 + $0xc0] sm:$0xff] }
 0x20f   :  { %v254_v18 = vsel %vm201_vm8, %v226_v17, -inf }
 0x210   :  { %255 = vmax.xlane.f32.xlu0 %v254_v18 }
 0x21a   :  { %v251_v20 = vpop.f32.mrf.mxu3 }
 0x21b   :  { %v252_v21 = vadd.f32 %v2075_v19, %v251_v20 }
 0x21d   :  { %v257_v22 = vsel %vm201_vm8, %v252_v21, -inf }
 0x21e   :  { %258 = vmax.xlane.f32.xlu2 %v257_v22 }
 0x283   :  { %v256_v23 = vpop.xlane.xlu0 %255 }
 0x284   :  { %v260_v24 = vsub.f32 %v226_v17, %v256_v23 }
 0x286   :  { %v262_v25 = vmul.f32 1.442695, %v260_v24  ;;  %v1662_v24 = vld [vmem:[%s2552_s6 + $0x8] sm:$0xff] }
 0x288   :  { %1803 = vpow2.f32 %v262_v25  ;;  %v1682_v25 = vld [vmem:[%s2551_s5 + $0x158] sm:$0xff] }
 0x28e   :  { %v1804_v26 = vpop.eup %1803 }
 0x28f   :  { %v266_v27 = vsel %vm201_vm8, %v1804_v26, 0.0 }
 0x290   :  { %267 = vadd.xlane.f32.xlu1 %v266_v27  ;;  %v1680_v27 = vld [vmem:[%s2551_s5 + $0x148] sm:$0xff] }
 0x291   :  { %v259_v28 = vpop.xlane.xlu2 %258 }
 0x292   :  { %v261_v29 = vsub.f32 %v252_v21, %v259_v28  ;;  %v1679_v28 = vld [vmem:[%s2551_s5 + $0x140] sm:$0xff] }
 0x294   :  { %v264_v30 = vmul.f32 1.442695, %v261_v29  ;;  %v1703_v29 = vld [vmem:[%s2551_s5 + $0xf8] sm:$0xff] }
 0x296   :  { %1805 = vpow2.f32 %v264_v30 }
 0x29c   :  { %v1806_v31 = vpop.eup %1805 }
 0x29d   :  { %v269_v32 = vsel %vm201_vm8, %v1806_v31, 0.0 }
 0x29e   :  { %270 = vadd.xlane.f32.xlu2 %v269_v32  ;;  %v1701_v32 = vld [vmem:[%s2551_s5 + $0xe8] sm:$0xff] }
 0x303   :  { %v268_v37 = vpop.xlane.xlu1 %267 }
 0x304   :  { %1807 = vrcp.f32 %v268_v37 }
 0x30a   :  { %v1808_v38 = vpop.eup %1807 }
 0x30b   :  { %v274_v39 = vmul.f32 %v1808_v38, %v1804_v26  ;;  %v1681_v26 = vld [vmem:[%s2551_s5 + $0x150] sm:$0xff] }
 0x30d   :  { %1636 = vmatmul.msk.f32.vlgmr.msrb.gmra.mxu3 %vm201_vm8, %v274_v39  ;;  %v1691_v39 = vld [vmem:[%s2552_s6 + $0x10] sm:$0xff] }
 0x30e   :  { %550 = vmatpush.msrb.mxu3 %v1662_v24 }
 0x311   :  { %v271_v40 = vpop.xlane.xlu2 %270 }
 0x312   :  { %1809 = vrcp.f32 %v271_v40 }
 0x315   :  { %1654 = vmatmul.msk.f32.vlgmr.msra.gmra.mxu3 %vm46_vm0, %v2035_v63 }
 0x316   :  { %660 = vmatpush.msra.mxu3 %v1682_v25 }
 0x318   :  { %v1810_v41 = vpop.eup %1809  ;;  %661 = vmatpush.msra.mxu3 %v1681_v26 }
 0x319   :  { %v275_v42 = vmul.f32 %v1810_v41, %v1806_v31  ;;  %v1702_v31 = vld [vmem:[%s2551_s5 + $0xf0] sm:$0xff] }
 0x31a   :  { %662 = vmatpush.msra.mxu3 %v1680_v27 }
 0x31b   :  { %1637 = vmatmul.msk.f32.vlgmr.msra.gmra.mxu0 %vm201_vm8, %v275_v42 }
 0x31c   :  { %1658 = vmatpush.xpose.msk.msra.mxu0 %vm201_vm8, %v376_v43  ;;  %663 = vmatpush.msra.mxu3 %v1679_v28 }
 0x31d   :  { %1655 = vmatmul.msk.f32.gmra.mxu3 %vm46_vm0, %v2044_v6 }
 0x323   :  { %1657 = vmatmul.msk.f32.vlgmr.msrb.gmra.mxu0 %vm201_vm8, %v345_v44 }
 0x324   :  { %579 = vmatpush.msrb.mxu0 %v322_v46 }
 0x32b   :  { %1659 = vmatmul.msk.f32.vlgmr.msra.gmra.mxu0 %vm201_vm8, %v348_v45 }
 0x390   :  { %v296_v47 = vpop.f32.mrf.mxu3 }
 0x391   :  { %1665 = vmatmul.msk.f32.vlgmr.msrb.gmra.mxu0 %vm201_vm8, %v296_v47 }
 0x398   :  { %v319_v48 = vpop.f32.mrf.mxu0  ;;  %v401_v49 = vpop.f32.mrf.mxu3 }
 0x399   :  { %499 = vmatpush.msra.mxu1 %v401_v49  ;;  %1666 = vmatmul.msk.f32.gmra.mxu0 %vm201_vm8, %v319_v48 }
 0x39b   :  { %604 = vmatpush.msrb.mxu1 %v1670_v7  ;;  %v1694_v7 = vld [vmem:[%s2551_s5 + $0x60] sm:$0xff] }
 0x39d   :  { %605 = vmatpush.msrb.mxu1 %v1669_v8  ;;  %v1709_v8 = vld [vmem:[%s2551_s5 + $0x178] sm:$0xff] }
 0x39f   :  { %606 = vmatpush.msrb.mxu1 %v1668_v9  ;;  %v1708_v9 = vld [vmem:[%s2551_s5 + $0x170] sm:$0xff] }
 0x3a0   :  { %v404_v50 = vpop.f32.mrf.mxu3  ;;  %v430_v51 = vpop.f32.mrf.mxu0 }
 0x3a1   :  { %v431_v52 = vadd.f32 %v2068_v15, %v430_v51  ;;  %522 = vmatpush.msra.mxu2 %v404_v50  ;;  %607 = vmatpush.msrb.mxu1 %v1667_v11  ;;  %v1707_v11 = vld [vmem:[%s2551_s5 + $0x168] sm:$0xff] }
 0x3a3   :  { %v459_v53 = vsel %vm201_vm8, %v431_v52, -inf  ;;  %632 = vmatpush.msrb.mxu2 %v1676_v12  ;;  %v1706_v12 = vld [vmem:[%s2551_s5 + $0x160] sm:$0xff] }
 0x3a4   :  { %460 = vmax.xlane.f32.xlu0 %v459_v53 }
 0x3a5   :  { %633 = vmatpush.msrb.mxu2 %v1675_v13 }
 0x3a7   :  { %634 = vmatpush.msrb.mxu2 %v1674_v14 }
 0x3a8   :  { %v456_v54 = vpop.f32.mrf.mxu0 }
 0x3a9   :  { %v457_v55 = vadd.f32 %v2075_v19, %v456_v54  ;;  %635 = vmatpush.msrb.mxu2 %v1673_v16 }
 0x3ab   :  { %v462_v56 = vsel %vm201_vm8, %v457_v55, -inf }
 0x3ac   :  { %463 = vmax.xlane.f32.xlu2 %v462_v56 }
 0x40e   :  { %v2191_v40 = vpop.f32.mrf.mxu0 }
 0x416   :  { %v584_v42 = vpop.f32.mrf.mxu0 }
 0x417   :  { %v461_v57 = vpop.xlane.xlu0 %460 }
 0x418   :  { %v465_v58 = vsub.f32 %v431_v52, %v461_v57 }
 0x41a   :  { %v467_v59 = vmul.f32 1.442695, %v465_v58 }
 0x41c   :  { %1811 = vpow2.f32 %v467_v59 }
 0x41f   :  { %v464_v60 = vpop.xlane.xlu2 %463 }
 0x420   :  { %v466_v61 = vsub.f32 %v457_v55, %v464_v60 }
 0x422   :  { %v1812_v62 = vpop.eup %1811  ;;  %v469_v1 = vmul.f32 1.442695, %v466_v61 }
 0x423   :  { %v471_v3 = vsel %vm201_vm8, %v1812_v62, 0.0 }
 0x424   :  { %1813 = vpow2.f32 %v469_v1  ;;  %472 = vadd.xlane.f32.xlu2 %v471_v3  ;;  %v1697_v3 = vld [vmem:[%s2551_s5 + $0x78] sm:$0xff] }
 0x42a   :  { %v1814_v4 = vpop.eup %1813 }
 0x42b   :  { %v474_v5 = vsel %vm201_vm8, %v1814_v4, 0.0 }
 0x42c   :  { %475 = vadd.xlane.f32.xlu1 %v474_v5  ;;  %v1695_v5 = vld [vmem:[%s2551_s5 + $0x68] sm:$0xff] }
 0x497   :  { %v473_v17 = vpop.xlane.xlu2 %472 }
 0x498   :  { %1815 = vrcp.f32 %v473_v17 }
 0x49e   :  { %v1816_v18 = vpop.eup %1815 }
 0x49f   :  { %v479_v20 = vmul.f32 %v1816_v18, %v1812_v62  ;;  %v476_v21 = vpop.xlane.xlu1 %475 }
 0x4a0   :  { %1817 = vrcp.f32 %v476_v21 }
 0x4a1   :  { %1660 = vmatmul.msk.f32.vlgmr.msra.gmra.mxu1 %vm201_vm8, %v479_v20 }
 0x4a6   :  { %v1818_v22 = vpop.eup %1817 }
 0x4a7   :  { %v480_v23 = vmul.f32 %v1818_v22, %v1814_v4  ;;  %v1696_v4 = vld [vmem:[%s2551_s5 + $0x70] sm:$0xff] }
 0x4a9   :  { %1661 = vmatmul.msk.f32.vlgmr.msra.gmra.mxu2 %vm201_vm8, %v480_v23  ;;  %1671 = vmatmul.msk.f32.vlgmr.msrb.gmra.mxu1 %vm46_vm0, %v2035_v63 }
 0x4b1   :  { %1672 = vmatmul.msk.f32.gmra.mxu1 %vm46_vm0, %v2044_v6  ;;  %1677 = vmatmul.msk.f32.vlgmr.msrb.gmra.mxu2 %vm46_vm0, %v2035_v63 }
 0x4b9   :  { %1678 = vmatmul.msk.f32.gmra.mxu2 %vm46_vm0, %v2044_v6 }
 0x51e   :  { %v501_v30 = vpop.f32.mrf.mxu1 }
 0x51f   :  { %1663 = vmatmul.msk.f32.vlgmr.msrb.gmra.mxu3 %vm201_vm8, %v501_v30 }
 0x520   :  { %869 = vmatpush.msrb.mxu3 %v1703_v29 }
 0x522   :  { %870 = vmatpush.msrb.mxu3 %v1702_v31 }
 0x524   :  { %871 = vmatpush.msrb.mxu3 %v1701_v32 }
 0x526   :  { %872 = vmatpush.msrb.mxu3 %v1700_v33  ;;  %v609_v36 = vpop.f32.mrf.mxu1 }
 0x52c   :  { %v524_v34 = vpop.f32.mrf.mxu2 }
 0x52d   :  { %1664 = vmatmul.msk.f32.gmra.mxu3 %vm201_vm8, %v524_v34 }
 0x52e   :  { %v612_v38 = vpop.f32.mrf.mxu1 }
 0x534   :  { %v637_v35 = vpop.f32.mrf.mxu2 }
 0x535   :  { %1683 = vmatmul.msk.f32.vlgmr.msra.gmra.mxu3 %vm46_vm0, %v2035_v63  ;;  %1685 = vmatpush.xpose.msk.msra.mxu0 %vm201_vm8, %v637_v35 }
 0x538   :  { %1686 = vmatmul.msk.f32.vlgmr.msra.gmra.mxu0 %vm201_vm8, %v609_v36 }
 0x53c   :  { %v640_v37 = vpop.f32.mrf.mxu2 }
 0x53d   :  { %1684 = vmatmul.msk.f32.gmra.mxu3 %vm46_vm0, %v2044_v6  ;;  %1687 = vmatpush.xpose.msk.msra.mxu1 %vm201_vm8, %v640_v37 }
 0x540   :  { %1688 = vmatmul.msk.f32.vlgmr.msra.gmra.mxu1 %vm201_vm8, %v612_v38 }
 0x541   :  { %814 = vmatpush.msrb.mxu1 %v1691_v39 }
 0x545   :  { %1704 = vmatmul.msk.f32.vlgmr.msrb.gmra.mxu3 %vm46_vm0, %v2035_v63 }
 0x54d   :  { %1705 = vmatmul.msk.f32.gmra.mxu3 %vm46_vm0, %v2044_v6 }
 0x5a2   :  { %v2193_v41 = vpop.f32.mrf.mxu3 }
 0x5b0   :  { %v555_v43 = vpop.f32.mrf.mxu3 }
 0x5b1   :  { %v2195_v44 = vadd.f32 %v584_v42, %v555_v43 }
 0x5b5   :  { %v694_v45 = vpop.f32.mrf.mxu0 }
 0x5b6   :  { %v695_v46 = vadd.f32 %v2068_v15, %v694_v45 }
 0x5b8   :  { %v665_v47 = vpop.f32.mrf.mxu3  ;;  %v723_v48 = vsel %vm201_vm8, %v695_v46, -inf }
 0x5b9   :  { %724 = vmax.xlane.f32.xlu0 %v723_v48  ;;  %763 = vmatpush.msra.mxu2 %v665_v47 }
 0x5bb   :  { %841 = vmatpush.msrb.mxu2 %v1697_v3 }
 0x5bd   :  { %v720_v49 = vpop.f32.mrf.mxu1  ;;  %842 = vmatpush.msrb.mxu2 %v1696_v4 }
 0x5be   :  { %v721_v50 = vadd.f32 %v2075_v19, %v720_v49 }
 0x5bf   :  { %843 = vmatpush.msrb.mxu2 %v1695_v5 }
 0x5c0   :  { %v668_v51 = vpop.f32.mrf.mxu3  ;;  %v726_v52 = vsel %vm201_vm8, %v721_v50, -inf }
 0x5c1   :  { %727 = vmax.xlane.f32.xlu1 %v726_v52  ;;  %786 = vmatpush.msrb.mxu0 %v668_v51  ;;  %v1718_v51 = vld [vmem:[%s2552_s6 + $0x18] sm:$0xff]  ;;  %v42_v52 = vld [vmem:[%s2548_s2 + $0x8] sm:$0xff] }
 0x5c2   :  { %844 = vmatpush.msrb.mxu2 %v1694_v7 }
 0x5c3   :  { %897 = vmatpush.msra.mxu0 %v1709_v8 }
 0x5c5   :  { %898 = vmatpush.msra.mxu0 %v1708_v9  ;;  %v2284_v9 = vld [vmem:[%s2549_s3] sm:$0x3] }
 0x5c7   :  { %899 = vmatpush.msra.mxu0 %v1707_v11 }
 0x5c8   :  { %v874_v53 = vpop.f32.mrf.mxu3 }
 0x5c9   :  { %1712 = vmatpush.xpose.msk.msra.mxu1 %vm201_vm8, %v874_v53  ;;  %900 = vmatpush.msra.mxu0 %v1706_v12  ;;  %v41_v53 = vld [vmem:[%s2548_s2] sm:$0xff]  ;;  %v1135_v12 = vrot.slane %v2284_v9, 1 }
 0x5d0   :  { %v877_v18 = vpop.f32.mrf.mxu3 }
 0x62c   :  { %v725_v54 = vpop.xlane.xlu0 %724 }
 0x62d   :  { %v729_v55 = vsub.f32 %v695_v46, %v725_v54  ;;  %v1870_v54 = vmov 0  }
 0x62e   :  { %1789 = vset.pattern.permute.xlu0 %v1870_v54  ;;  %1788 = vset.pattern.permute.xlu2 %v1870_v54  ;;  %v1747_v54 = vld [vmem:[%s2553_s7 + $0xb8] sm:$0xff] }
 0x62f   :  { %v731_v56 = vmul.f32 1.442695, %v729_v55 }
 0x631   :  { %1819 = vpow2.f32 %v731_v56 }
 0x634   :  { %v728_v57 = vpop.xlane.xlu1 %727 }
 0x635   :  { %v730_v58 = vsub.f32 %v721_v50, %v728_v57 }
 0x637   :  { %v1820_v59 = vpop.eup %1819  ;;  %v733_v60 = vmul.f32 1.442695, %v730_v58 }
 0x638   :  { %v735_v61 = vsel %vm201_vm8, %v1820_v59, 0.0 }
 0x639   :  { %1821 = vpow2.f32 %v733_v60  ;;  %736 = vadd.xlane.f32.xlu2 %v735_v61 }
 0x63f   :  { %v1822_v62 = vpop.eup %1821 }
 0x640   :  { %v738_v1 = vsel %vm201_vm8, %v1822_v62, 0.0 }
 0x641   :  { %739 = vadd.xlane.f32.xlu0 %v738_v1 }
 0x6ac   :  { %v737_v13 = vpop.xlane.xlu2 %736 }
 0x6ad   :  { %1823 = vrcp.f32 %v737_v13 }
 0x6b3   :  { %v1824_v14 = vpop.eup %1823 }
 0x6b4   :  { %v743_v16 = vmul.f32 %v1824_v14, %v1820_v59  ;;  %v740_v17 = vpop.xlane.xlu0 %739 }
 0x6b5   :  { %1825 = vrcp.f32 %v740_v17 }
 0x6b6   :  { %1689 = vmatmul.msk.f32.vlgmr.msra.gmra.mxu2 %vm201_vm8, %v743_v16 }
 0x6b7   :  { %1714 = vmatpush.xpose.msk.msra.mxu2 %vm201_vm8, %v877_v18 }
 0x6bb   :  { %v1826_v20 = vpop.eup %1825 }
 0x6bc   :  { %v744_v21 = vmul.f32 %v1826_v20, %v1822_v62 }
 0x6be   :  { %1690 = vmatmul.msk.f32.vlgmr.msrb.gmra.mxu0 %vm201_vm8, %v744_v21  ;;  %1698 = vmatmul.msk.f32.vlgmr.msrb.gmra.mxu2 %vm46_vm0, %v2035_v63 }
 0x6c6   :  { %1699 = vmatmul.msk.f32.gmra.mxu2 %vm46_vm0, %v2044_v6  ;;  %1710 = vmatmul.msk.f32.vlgmr.msra.gmra.mxu0 %vm46_vm0, %v2035_v63  ;;  %v582_v63 = vadd.f32 %v2191_v40, %v2193_v41 }
 0x6ce   :  { %1711 = vmatmul.msk.f32.gmra.mxu0 %vm46_vm0, %v2044_v6 }
 0x739   :  { %v765_v22 = vpop.f32.mrf.mxu2 }
 0x73a   :  { %1692 = vmatmul.msk.f32.vlgmr.msrb.gmra.mxu1 %vm201_vm8, %v765_v22 }
 0x73b   :  { %v788_v23 = vpop.f32.mrf.mxu0 }
 0x741   :  { %v846_v24 = vpop.f32.mrf.mxu2 }
 0x742   :  { %1693 = vmatmul.msk.f32.gmra.mxu1 %vm201_vm8, %v788_v23  ;;  %v1136_v23 = vperm.slane %v2284_v9, 0 }
 0x743   :  { %v902_v25 = vpop.f32.mrf.mxu0 }
 0x744   :  { %1000 = vmatpush.msrb.mxu1 %v902_v25  ;;  %v1153_v25 = vld [vmem:[%s2553_s7 + $0x20] sm:$0xff] }
 0x745   :  { %1209 = vmatpush.msra.mxu3 %v1153_v25 }
 0x749   :  { %v849_v26 = vpop.f32.mrf.mxu2 }
 0x74a   :  { %1713 = vmatmul.msk.f32.vlgmr.msra.gmra.mxu1 %vm201_vm8, %v846_v24  ;;  %1715 = vmatmul.msk.f32.vlgmr.msra.gmra.mxu2 %vm201_vm8, %v849_v26  ;;  %v1725_v24 = vld [vmem:[%s2553_s7 + $0x48] sm:$0xff]  ;;  %v1734_v26 = vld [vmem:[%s2553_s7 + $0x70] sm:$0xff] }
 0x74b   :  { %v905_v27 = vpop.f32.mrf.mxu0  ;;  %1051 = vmatpush.msra.mxu1 %v1718_v51  ;;  %1180 = vmatpush.msrb.mxu2 %v1725_v24 }
 0x74c   :  { %1023 = vmatpush.msrb.mxu0 %v905_v27  ;;  %v1741_v27 = vld [vmem:[%s2553_s7 + $0x98] sm:$0xff] }
 0x74e   :  { %1246 = vmatpush.msra.mxu0 %v1734_v26  ;;  %v1795_v26 = vld [vmem:[%s2550_s4 + $0x3] ss:$0 sm:$0xff] }
 0x7b7   :  { %v816_v6 = vpop.f32.mrf.mxu1 }
 0x7b8   :  { %v822_v28 = vadd.f32 %v816_v6, %v582_v63  ;;  %v1724_v63 = vld [vmem:[%s2553_s7 + $0x40] sm:$0xff]  ;;  %v1152_v6 = vld [vmem:[%s2553_s7 + $0x18] sm:$0xff] }
 0x7b9   :  { %1181 = vmatpush.msrb.mxu2 %v1724_v63  ;;  %1210 = vmatpush.msra.mxu3 %v1152_v6 }
 0x7bf   :  { %v819_v29 = vpop.f32.mrf.mxu1 }
 0x7c0   :  { %v823_v30 = vadd.f32 %v819_v29, %v2195_v44  ;;  %v1872_v29 = vmov 0.0  }
 0x7c1   :  { %1128 = vst.msk [vmem:[#allocation2] sm:$0xf] %vm1127_vm9, %v1872_v29 }
 0x7c2   :  { %1129 = vst.msk [vmem:[#allocation2 + $0x10] sm:$0xf] %vm1127_vm9, %v1872_v29 }
 0x7c3   :  { %1130 = vst.msk [vmem:[#allocation2 + $0xc] sm:$0xf] %vm1127_vm9, %v1872_v29 }
 0x7c4   :  { %1131 = vst.msk [vmem:[#allocation2 + $0x1c] sm:$0xf] %vm1127_vm9, %v1872_v29 }
 0x7c7   :  { %v931_v31 = vpop.f32.mrf.mxu1 }
 0x7c8   :  { %v932_v32 = vadd.f32 %v2068_v15, %v931_v31  ;;  %v1740_v31 = vld [vmem:[%s2553_s7 + $0x90] sm:$0xff] }
 0x7ca   :  { %v960_v33 = vsel %vm201_vm8, %v932_v32, -inf }
 0x7cb   :  { %961 = vmax.xlane.f32.xlu1 %v960_v33  ;;  %v1151_v33 = vld [vmem:[%s2553_s7 + $0x10] sm:$0xff] }
 0x7cc   :  { %1211 = vmatpush.msra.mxu3 %v1151_v33 }
 0x7cd   :  { %v957_v34 = vpop.f32.mrf.mxu2 }
 0x7ce   :  { %v958_v35 = vadd.f32 %v2075_v19, %v957_v34 }
 0x7d0   :  { %v963_v36 = vsel %vm201_vm8, %v958_v35, -inf }
 0x7d1   :  { %964 = vmax.xlane.f32.xlu2 %v963_v36  ;;  %v1739_v36 = vld [vmem:[%s2553_s7 + $0x88] sm:$0xff] }
 0x7e9   :  { %1065 = vperm.xlu2 %1788, %v41_v53  }
 0x83e   :  { %v962_v37 = vpop.xlane.xlu1 %961 }
 0x83f   :  { %v966_v38 = vsub.f32 %v932_v32, %v962_v37  ;;  %v1723_v32 = vld [vmem:[%s2553_s7 + $0x38] sm:$0xff]  ;;  %v1722_v37 = vld [vmem:[%s2553_s7 + $0x30] sm:$0xff] }
 0x840   :  { %1182 = vmatpush.msrb.mxu2 %v1723_v32 }
 0x841   :  { %v968_v39 = vmul.f32 1.442695, %v966_v38  ;;  %v1150_v38 = vld [vmem:[%s2553_s7 + $0x8] sm:$0xff] }
 0x842   :  { %1183 = vmatpush.msrb.mxu2 %v1722_v37  ;;  %1212 = vmatpush.msra.mxu3 %v1150_v38 }
 0x843   :  { %1827 = vpow2.f32 %v968_v39  ;;  %v1731_v39 = vld [vmem:[%s2553_s7 + $0x58] sm:$0xff] }
 0x844   :  { %v965_v40 = vpop.xlane.xlu2 %964 }
 0x845   :  { %v967_v41 = vsub.f32 %v958_v35, %v965_v40  ;;  %v1732_v35 = vld [vmem:[%s2553_s7 + $0x60] sm:$0xff] }
 0x846   :  { %v1738_v40 = vld [vmem:[%s2553_s7 + $0x80] sm:$0xff] }
 0x847   :  { %v970_v42 = vmul.f32 1.442695, %v967_v41 }
 0x849   :  { %v1828_v43 = vpop.eup %1827  ;;  %1829 = vpow2.f32 %v970_v42  ;;  %v1721_v42 = vld [vmem:[%s2553_s7 + $0x28] sm:$0xff] }
 0x84a   :  { %v972_v15 = vsel %vm201_vm8, %v1828_v43, 0.0  ;;  %1184 = vmatpush.msrb.mxu2 %v1721_v42 }
 0x84b   :  { %973 = vadd.xlane.f32.xlu0 %v972_v15  ;;  %v1730_v15 = vld [vmem:[%s2553_s7 + $0x50] sm:$0xff] }
 0x84c   :  { %v2265_v59 = vpop.permute.xlu2 %1065 }
 0x84f   :  { %v1830_v44 = vpop.eup %1829 }
 0x850   :  { %v975_v45 = vsel %vm201_vm8, %v1830_v44, 0.0 }
 0x851   :  { %976 = vadd.xlane.f32.xlu1 %v975_v45  ;;  %v1748_v45 = vld [vmem:[%s2553_s7 + $0xc0] sm:$0xff] }
 0x852   :  { %1324 = vmatpush.msra.mxu2 %v1748_v45  ;;  %v1772_v45 = vld [vmem:[%s2553_s7 + $0x140] sm:$0xff] }
 0x854   :  { %1325 = vmatpush.msra.mxu2 %v1747_v54 }
 0x85f   :  { %1070 = vperm.xlu0 %1789, %v42_v52  }
 0x8be   :  { %v974_v19 = vpop.xlane.xlu0 %973 }
 0x8bf   :  { %1831 = vrcp.f32 %v974_v19  ;;  %v1755_v19 = vld [vmem:[%s2553_s7 + $0xe8] sm:$0xff] }
 0x8c4   :  { %v977_v46 = vpop.xlane.xlu1 %976 }
 0x8c5   :  { %v1832_v47 = vpop.eup %1831  ;;  %1833 = vrcp.f32 %v977_v46  ;;  %v1762_v46 = vld [vmem:[%s2553_s7 + $0x110] sm:$0xff] }
 0x8c6   :  { %v980_v48 = vmul.f32 %v1832_v47, %v1828_v43  ;;  %v1149_v43 = vld [vmem:[%s2553_s7] sm:$0xff] }
 0x8c7   :  { %1213 = vmatpush.msra.mxu3 %v1149_v43 }
 0x8c8   :  { %1716 = vmatmul.msk.f32.vlgmr.msrb.gmra.mxu1 %vm201_vm8, %v980_v48  ;;  %v1769_v48 = vld [vmem:[%s2553_s7 + $0x138] sm:$0xff] }
 0x8c9   :  { %1285 = vmatpush.msrb.mxu1 %v1741_v27  ;;  %1363 = vmatpush.msrb.mxu3 %v1755_v19 }
 0x8cb   :  { %v1834_v49 = vpop.eup %1833  ;;  %1286 = vmatpush.msrb.mxu1 %v1740_v31 }
 0x8cc   :  { %v981_v50 = vmul.f32 %v1834_v49, %v1830_v44  ;;  %v1737_v44 = vld [vmem:[%s2553_s7 + $0x78] sm:$0xff] }
 0x8cd   :  { %1287 = vmatpush.msrb.mxu1 %v1739_v36 }
 0x8ce   :  { %1717 = vmatmul.msk.f32.vlgmr.msrb.gmra.mxu0 %vm201_vm8, %v981_v50 }
 0x8cf   :  { %1288 = vmatpush.msrb.mxu1 %v1738_v40  ;;  %v1774_v40 = vld [vmem:[%s2553_s7 + $0x150] sm:$0xff] }
 0x8d1   :  { %v2273_v4 = vpop.permute.xlu0 %1070  ;;  %1289 = vmatpush.msrb.mxu1 %v1737_v44 }
 0x945   :  { %v1002_v55 = vpop.f32.mrf.mxu1 }
 0x946   :  { %1719 = vmatmul.msk.f32.vlgmr.msra.gmra.mxu1 %vm201_vm8, %v1002_v55  ;;  %v1754_v55 = vld [vmem:[%s2553_s7 + $0xe0] sm:$0xff] }
 0x947   :  { %1441 = vmatpush.msra.mxu1 %v1769_v48  ;;  %1364 = vmatpush.msrb.mxu3 %v1754_v55  ;;  %v1533_v55 = vld [vmem:[%s2556_s10 + $0x78] sm:$0xff] }
 0x94b   :  { %v1025_v56 = vpop.f32.mrf.mxu0 }
 0x94e   :  { %1720 = vmatmul.msk.f32.gmra.mxu1 %vm201_vm8, %v1025_v56 }
 0x9c3   :  { %v1053_v57 = vpop.f32.mrf.mxu1 }
 0x9c4   :  { %v1059_v58 = vadd.f32 %v1053_v57, %v822_v28  ;;  %v1733_v28 = vld [vmem:[%s2553_s7 + $0x68] sm:$0xff]  ;;  %v1768_v57 = vld [vmem:[%s2553_s7 + $0x130] sm:$0xff] }
 0x9c5   :  { %1247 = vmatpush.msra.mxu0 %v1733_v28  ;;  %1442 = vmatpush.msra.mxu1 %v1768_v57 }
 0x9c6   :  { %v1061_v60 = vadd.f32 %v1059_v58, %v1939_v0  ;;  %v1746_v58 = vld [vmem:[%s2553_s7 + $0xb0] sm:$0xff] }
 0x9c7   :  { %1248 = vmatpush.msra.mxu0 %v1732_v35  ;;  %1326 = vmatpush.msra.mxu2 %v1746_v58  ;;  %v1776_v35 = vld [vmem:[%s2553_s7 + $0x160] sm:$0xff] }
 0x9c8   :  { %v2269_v61 = vmul.f32 %v2265_v59, %v1061_v60  ;;  %v1753_v60 = vld [vmem:[%s2553_s7 + $0xd8] sm:$0xff] }
 0x9c9   :  { %1249 = vmatpush.msra.mxu0 %v1731_v39  ;;  %1365 = vmatpush.msrb.mxu3 %v1753_v60  ;;  %v1775_v39 = vld [vmem:[%s2553_s7 + $0x158] sm:$0xff]  ;;  %v1530_v60 = vld [vmem:[%s2556_s10 + $0x60] sm:$0xff] }
 0x9ca   :  { %v1077_v62 = vsel %vm46_vm0, %v2269_v61, 0.0 }
 0x9cb   :  { %1078 = vadd.xlane.f32.xlu1 %v1077_v62  ;;  %v1056_v1 = vpop.f32.mrf.mxu1  ;;  %1250 = vmatpush.msra.mxu0 %v1730_v15  ;;  %v1760_v62 = vld [vmem:[%s2553_s7 + $0x100] sm:$0xff] }
 0x9cc   :  { %v1060_v3 = vadd.f32 %v1056_v1, %v823_v30  ;;  %v1767_v1 = vld [vmem:[%s2553_s7 + $0x128] sm:$0xff] }
 0x9cd   :  { %1402 = vmatpush.msrb.mxu0 %v1762_v46  ;;  %1443 = vmatpush.msra.mxu1 %v1767_v1  ;;  %v1529_v1 = vld [vmem:[%s2556_s10 + $0x58] sm:$0xff] }
 0x9ce   :  { %v1062_v5 = vadd.f32 %v1060_v3, %v1946_v2  ;;  %v1137_v2 = vperm.slane %v1135_v12, 0  ;;  %v1745_v3 = vld [vmem:[%s2553_s7 + $0xa8] sm:$0xff] }
 0x9cf   :  { %1327 = vmatpush.msra.mxu2 %v1745_v3  ;;  %v1528_v3 = vld [vmem:[%s2556_s10 + $0x50] sm:$0xff] }
 0x9d0   :  { %v2277_v7 = vmul.f32 %v2273_v4, %v1062_v5  ;;  %1140 = vrot.lane.b32.xlu0 %v1137_v2, %s1871_s12  ;;  %v1744_v2 = vld [vmem:[%s2553_s7 + $0xa0] sm:$0xff] }
 0x9d1   :  { %1328 = vmatpush.msra.mxu2 %v1744_v2  ;;  %v1526_v2 = vld [vmem:[%s2556_s10 + $0x40] sm:$0xff] }
 0x9d2   :  { %v1080_v8 = vsel %vm46_vm0, %v2277_v7, 0.0 }
 0x9d3   :  { %1081 = vadd.xlane.f32.xlu1 %v1080_v8  ;;  %v1752_v8 = vld [vmem:[%s2553_s7 + $0xd0] sm:$0xff] }
 0x9d4   :  { %1366 = vmatpush.msrb.mxu3 %v1752_v8 }
 0xa3e   :  { %v1079_v0 = vpop.xlane.xlu1 %1078 }
 0xa3f   :  { %v1083_v11 = vmul.f32 %v1079_v0, %v1950_v10  ;;  %v1759_v0 = vld [vmem:[%s2553_s7 + $0xf8] sm:$0xff] }
 0xa41   :  { %v2289_v13 = vsub.f32 %v2269_v61, %v1083_v11  ;;  %v1766_v11 = vld [vmem:[%s2553_s7 + $0x120] sm:$0xff] }
 0xa42   :  { %1444 = vmatpush.msra.mxu1 %v1766_v11  ;;  %v1141_v33 = vpop.permute.xlu0 %1140 }
 0xa43   :  { %v1087_v14 = vmul.f32 %v2289_v13, %v2289_v13 }
 0xa45   :  { %v1089_v16 = vsel %vm46_vm0, %v1087_v14, 0.0  ;;  %v1751_v14 = vld [vmem:[%s2553_s7 + $0xc8] sm:$0xff] }
 0xa46   :  { %1090 = vadd.xlane.f32.xlu1 %v1089_v16  ;;  %v1082_v17 = vpop.xlane.xlu1 %1081  ;;  %1367 = vmatpush.msrb.mxu3 %v1751_v14  ;;  %v1525_v14 = vld [vmem:[%s2556_s10 + $0x38] sm:$0xff] }
 0xa47   :  { %v1084_v18 = vmul.f32 %v1082_v17, %v1950_v10 }
 0xa49   :  { %v2296_v20 = vsub.f32 %v2277_v7, %v1084_v18  ;;  %v1758_v18 = vld [vmem:[%s2553_s7 + $0xf0] sm:$0xff] }
 0xa4b   :  { %v1088_v21 = vmul.f32 %v2296_v20, %v2296_v20 }
 0xa4d   :  { %v1092_v22 = vsel %vm46_vm0, %v1088_v21, 0.0  ;;  %v1765_v21 = vld [vmem:[%s2553_s7 + $0x118] sm:$0xff] }
 0xa4e   :  { %1093 = vadd.xlane.f32.xlu2 %v1092_v22  ;;  %v1794_v22 = vld [vmem:[%s2550_s4 + $0x2] ss:$0 sm:$0xff]  ;;  %1445 = vmatpush.msra.mxu1 %v1765_v21  ;;  %v1523_v21 = vld [vmem:[%s2556_s10 + $0x28] sm:$0xff] }
 0xa5f   :  { %1138 = vrot.lane.b32.xlu1 %v1136_v23, %s1871_s12 }
 0xab9   :  { %v1091_v30 = vpop.xlane.xlu1 %1090 }
 0xaba   :  { %v1095_v34 = vmul.f32 %v1091_v30, %v1950_v10 }
 0xabc   :  { %v2355_v41 = vadd.f32 1e-05, %v1095_v34 }
 0xabe   :  { %1835 = vrsqrt.f32 %v2355_v41  ;;  %vm1105_vm11 = vweird.f32 %v2355_v41 }
 0xac1   :  { %v1094_v47 = vpop.xlane.xlu2 %1093 }
 0xac2   :  { %v1096_v49 = vmul.f32 %v1094_v47, %v1950_v10  ;;  %v1761_v10 = vld [vmem:[%s2553_s7 + $0x108] sm:$0xff] }
 0xac3   :  { %1403 = vmatpush.msrb.mxu0 %v1761_v10  ;;  %v1532_v10 = vld [vmem:[%s2556_s10 + $0x70] sm:$0xff] }
 0xac4   :  { %v1836_v50 = vpop.eup %1835  ;;  %v1098_v51 = vadd.f32 1e-05, %v1096_v49 }
 0xac5   :  { %v1100_v52 = vmul.f32 %v1836_v50, %v2355_v41  ;;  %vm1106_vm10 = vweird.f32 %v1836_v50  ;;  %1404 = vmatpush.msrb.mxu0 %v1760_v62  ;;  %v1773_v41 = vld [vmem:[%s2553_s7 + $0x148] sm:$0xff] }
 0xac6   :  { %1837 = vrsqrt.f32 %v1098_v51  ;;  %vm1107_vm12 = vmor %vm1105_vm11, %vm1106_vm10  ;;  %vm1115_vm15 = vweird.f32 %v1098_v51 }
 0xac7   :  { %v1101_v53 = vmul.f32 %v1836_v50, %v1100_v52  ;;  %1405 = vmatpush.msrb.mxu0 %v1759_v0 }
 0xac9   :  { %v1102_v56 = vmul.f32 0.5, %v1101_v53  ;;  %1406 = vmatpush.msrb.mxu0 %v1758_v18 }
 0xacb   :  { %v1103_v5 = vsub.f32 1.5, %v1102_v56  ;;  %v1531_v56 = vld [vmem:[%s2556_s10 + $0x68] sm:$0xff] }
 0xacc   :  { %v1838_v12 = vpop.eup %1837 }
 0xacd   :  { %v1104_v16 = vmul.f32 %v1836_v50, %v1103_v5  ;;  %v1110_v17 = vmul.f32 %v1838_v12, %v1098_v51  ;;  %vm1116_vm13 = vweird.f32 %v1838_v12  ;;  %v1527_v5 = vld [vmem:[%s2556_s10 + $0x48] sm:$0xff] }
 0xace   :  { %vm1117_vm1 = vmor %vm1115_vm15, %vm1116_vm13 }
 0xacf   :  { %v1108_v23 = vsel %vm1107_vm12, %v1836_v50, %v1104_v16  ;;  %v1111_v24 = vmul.f32 %v1838_v12, %v1110_v17  ;;  %v1524_v16 = vld [vmem:[%s2556_s10 + $0x30] sm:$0xff] }
 0xad0   :  { %v1119_v25 = vmul.f32 %v1108_v23, %v2289_v13  ;;  %v1522_v23 = vld [vmem:[%s2556_s10 + $0x20] sm:$0xff] }
 0xad1   :  { %v1112_v27 = vmul.f32 0.5, %v1111_v24  ;;  %v1139_v29 = vpop.permute.xlu1 %1138 }
 0xad2   :  { %v1122_v63 = vmul.f32 %v1794_v22, %v1119_v25 }
 0xad3   :  { %v1113_v6 = vsub.f32 1.5, %v1112_v27  ;;  %v1521_v27 = vld [vmem:[%s2556_s10 + $0x18] sm:$0xff] }
 0xad4   :  { %v1125_v28 = vadd.f32 %v1795_v26, %v1122_v63 }
 0xad5   :  { %v1114_v30 = vmul.f32 %v1838_v12, %v1113_v6 }
 0xad6   :  { %1132 = vst.msk [vmem:[#allocation2 + $0x4] sm:$0xff] %vm46_vm0, %v1125_v28  ;;  %v1520_v28 = vld [vmem:[%s2556_s10 + $0x10] sm:$0xff] }
 0xad7   :  { %v1118_v31 = vsel %vm1117_vm1, %v1838_v12, %v1114_v30  ;;  %1145 = vst.msk [vmem:[#allocation2 + $0x4] sm:$0xff] %vm1144_vm14, %v1139_v29  ;;  %v1519_v30 = vld [vmem:[%s2556_s10 + $0x8] sm:$0xff] }
 0xad8   :  { %v1120_v13 = vmul.f32 %v1118_v31, %v2296_v20 }
 0xada   :  { %v1123_v32 = vmul.f32 %v1794_v22, %v1120_v13 }
 0xadc   :  { %v1126_v34 = vadd.f32 %v1795_v26, %v1123_v32 }
 0xade   :  { %1133 = vst.msk [vmem:[#allocation2 + $0x14] sm:$0xff] %vm46_vm0, %v1126_v34  ;;  %v1154_v36 = vld [vmem:[#allocation2 + $0x1] sm:$0xff] }
 0xadf   :  { %v1147_v37 = vld [vmem:[#allocation2] sm:$0xff]  ;;  %1146 = vst.msk [vmem:[#allocation2 + $0x14] sm:$0xff] %vm1144_vm14, %v1141_v33  ;;  %1726 = vmatmul.msk.f32.vlgmr.msrb.gmra.mxu2 %vm1162_vm2, %v1154_v36  ;;  %v1455_v53 = vld [vmem:[#allocation2 + $0x8] sm:$0xff] }
 0xae0   :  { %v1221_v38 = vld [vmem:[#allocation2 + $0x2] sm:$0xff]  ;;  %1728 = vmatmul.msk.f32.vlgmr.msra.gmra.mxu3 %vm1162_vm2, %v1147_v37  ;;  %1480 = vmatpush.msrb.mxu2 %v1776_v35 }
 0xae1   :  { %v1260_v20 = vld [vmem:[#allocation2 + $0x3] sm:$0xff]  ;;  %1735 = vmatmul.msk.f32.vlgmr.msra.gmra.mxu0 %vm1162_vm2, %v1221_v38  ;;  %1534 = vmatpush.msra.mxu3 %v1533_v55 }
 0xae2   :  { %1742 = vmatmul.msk.f32.vlgmr.msrb.gmra.mxu1 %vm1162_vm2, %v1260_v20  ;;  %1481 = vmatpush.msrb.mxu2 %v1775_v39  ;;  %v1299_v19 = vld [vmem:[#allocation2 + $0x4] sm:$0xff] }
 0xae3   :  { %v1338_v46 = vld [vmem:[#allocation2 + $0x5] sm:$0xff]  ;;  %1535 = vmatpush.msra.mxu3 %v1532_v10 }
 0xae4   :  { %1482 = vmatpush.msrb.mxu2 %v1774_v40  ;;  %v1377_v47 = vld [vmem:[#allocation2 + $0x6] sm:$0xff] }
 0xae5   :  { %v1416_v48 = vld [vmem:[#allocation2 + $0x7] sm:$0xff]  ;;  %1536 = vmatpush.msra.mxu3 %v1531_v56 }
 0xae6   :  { %v1155_v42 = vld [vmem:[#allocation2 + $0x11] sm:$0xff]  ;;  %1483 = vmatpush.msrb.mxu2 %v1773_v41  ;;  %v1518_v33 = vld [vmem:[%s2556_s10] sm:$0xff]  ;;  %v1558_v35 = vld [vmem:[%s2555_s9 + $0x8] sm:$0x1] }
 0xae7   :  { %v1148_v43 = vld [vmem:[#allocation2 + $0x10] sm:$0xff]  ;;  %1727 = vmatmul.msk.f32.gmra.mxu2 %vm1162_vm2, %v1155_v42  ;;  %v1456_v54 = vld [vmem:[#allocation2 + $0x18] sm:$0xff]  ;;  %1537 = vmatpush.msra.mxu3 %v1530_v60  ;;  %v1557_v36 = vld [vmem:[%s2555_s9] sm:$0xff] }
 0xae8   :  { %v1222_v15 = vld [vmem:[#allocation2 + $0x12] sm:$0xff]  ;;  %1729 = vmatmul.msk.f32.gmra.mxu3 %vm1162_vm2, %v1148_v43  ;;  %1484 = vmatpush.msrb.mxu2 %v1772_v45  ;;  %v1796_v42 = vld [vmem:[%s2554_s8] ss:$0 sm:$0xff]  ;;  %s1873_s8 = smov [#allocation3]  }
 0xae9   :  { %v1261_v44 = vld [vmem:[#allocation2 + $0x13] sm:$0xff]  ;;  %1736 = vmatmul.msk.f32.gmra.mxu0 %vm1162_vm2, %v1222_v15  ;;  %1538 = vmatpush.msra.mxu3 %v1529_v1  ;;  %s1604_s9 = sshll.u32 %s1873_s8, 4  ;;  %s1605_s9 = int_to_ptr.vmem [resolvable:$true] %s1604_s9 }
 0xaea   :  { %1743 = vmatmul.msk.f32.gmra.mxu1 %vm1162_vm2, %v1261_v44  ;;  %v1300_v49 = vld [vmem:[#allocation2 + $0x14] sm:$0xff]  ;;  %1779 = vmatpush.msk.msra.mxu0 %vm1562_vm3, %v1558_v35 }
 0xaeb   :  { %v1339_v50 = vld [vmem:[#allocation2 + $0x15] sm:$0xff]  ;;  %1539 = vmatpush.msra.mxu3 %v1528_v3 }
 0xaec   :  { %v1378_v51 = vld [vmem:[#allocation2 + $0x16] sm:$0xff]  ;;  %1581 = vmatpush.msra.mxu0 %v1557_v36 }
 0xaed   :  { %v1417_v52 = vld [vmem:[#allocation2 + $0x17] sm:$0xff]  ;;  %1540 = vmatpush.msra.mxu3 %v1527_v5 }
 0xaef   :  { %1749 = vmatmul.msk.f32.vlgmr.msra.gmra.mxu2 %vm1162_vm2, %v1299_v19  ;;  %1541 = vmatpush.msra.mxu3 %v1526_v2 }
 0xaf0   :  { %1756 = vmatmul.msk.f32.vlgmr.msrb.gmra.mxu3 %vm1162_vm2, %v1338_v46 }
 0xaf1   :  { %1763 = vmatmul.msk.f32.vlgmr.msrb.gmra.mxu0 %vm1162_vm2, %v1377_v47  ;;  %1542 = vmatpush.msra.mxu3 %v1525_v14 }
 0xaf2   :  { %1770 = vmatmul.msk.f32.vlgmr.msra.gmra.mxu1 %vm1162_vm2, %v1416_v48 }
 0xaf3   :  { %1543 = vmatpush.msra.mxu3 %v1524_v16 }
 0xaf5   :  { %1544 = vmatpush.msra.mxu3 %v1523_v21 }
 0xaf7   :  { %1750 = vmatmul.msk.f32.gmra.mxu2 %vm1162_vm2, %v1300_v49  ;;  %1545 = vmatpush.msra.mxu3 %v1522_v23 }
 0xaf8   :  { %1757 = vmatmul.msk.f32.gmra.mxu3 %vm1162_vm2, %v1339_v50 }
 0xaf9   :  { %1764 = vmatmul.msk.f32.gmra.mxu0 %vm1162_vm2, %v1378_v51  ;;  %1546 = vmatpush.msra.mxu3 %v1521_v27 }
 0xafa   :  { %1771 = vmatmul.msk.f32.gmra.mxu1 %vm1162_vm2, %v1417_v52 }
 0xafb   :  { %1547 = vmatpush.msra.mxu3 %v1520_v28 }
 0xafd   :  { %1548 = vmatpush.msra.mxu3 %v1519_v30 }
 0xaff   :  { %1777 = vmatmul.msk.f32.vlgmr.msrb.gmra.mxu2 %vm1162_vm2, %v1455_v53  ;;  %1549 = vmatpush.msra.mxu3 %v1518_v33 }
 0xb01   :  { %1780 = vmatmul.msk.f32.vlgmr.msra.gmra.mxu0 %vm1559_vm4, %v2284_v9 }
 0xb07   :  { %1778 = vmatmul.msk.f32.gmra.mxu2 %vm1162_vm2, %v1456_v54 }
 0xb5e   :  { %v1252_v62 = vpop.f32.mrf.mxu0 }
 0xb5f   :  { %v1291_v8 = vpop.f32.mrf.mxu1 }
 0xb62   :  { %v1186_v57 = vpop.f32.mrf.mxu2 }
 0xb63   :  { %v1215_v58 = vpop.f32.mrf.mxu3 }
 0xb64   :  { %v1216_v11 = vadd.f32 %v1215_v58, %v1186_v57 }
 0xb66   :  { %v1258_v17 = vadd.f32 %v1252_v62, %v1216_v11  ;;  %v1255_v18 = vpop.f32.mrf.mxu0 }
 0xb67   :  { %v1294_v26 = vpop.f32.mrf.mxu1 }
 0xb68   :  { %v1297_v25 = vadd.f32 %v1291_v8, %v1258_v17 }
 0xb6a   :  { %v1189_v0 = vpop.f32.mrf.mxu2 }
 0xb6b   :  { %v1218_v12 = vpop.f32.mrf.mxu3 }
 0xb6c   :  { %v1219_v24 = vadd.f32 %v1218_v12, %v1189_v0 }
 0xb6e   :  { %v1259_v29 = vadd.f32 %v1255_v18, %v1219_v24  ;;  %v1408_v13 = vpop.f32.mrf.mxu0 }
 0xb6f   :  { %v1447_v20 = vpop.f32.mrf.mxu1 }
 0xb70   :  { %v1298_v34 = vadd.f32 %v1294_v26, %v1259_v29 }
 0xb72   :  { %v1330_v22 = vpop.f32.mrf.mxu2 }
 0xb73   :  { %v1336_v63 = vadd.f32 %v1330_v22, %v1297_v25  ;;  %v1369_v6 = vpop.f32.mrf.mxu3 }
 0xb75   :  { %v1375_v31 = vadd.f32 %v1369_v6, %v1336_v63 }
 0xb76   :  { %v1411_v44 = vpop.f32.mrf.mxu0 }
 0xb77   :  { %v1414_v37 = vadd.f32 %v1408_v13, %v1375_v31  ;;  %v1450_v47 = vpop.f32.mrf.mxu1 }
 0xb79   :  { %v1453_v41 = vadd.f32 %v1447_v20, %v1414_v37 }
 0xb7a   :  { %v1333_v32 = vpop.f32.mrf.mxu2 }
 0xb7b   :  { %v1337_v38 = vadd.f32 %v1333_v32, %v1298_v34  ;;  %v1372_v39 = vpop.f32.mrf.mxu3 }
 0xb7d   :  { %v1376_v40 = vadd.f32 %v1372_v39, %v1337_v38 }
 0xb7e   :  { %v1583_v12 = vpop.f32.mrf.mxu0 }
 0xb7f   :  { %v1415_v45 = vadd.f32 %v1411_v44, %v1376_v40  ;;  %v1590_v2 = vperm.slane %v1583_v12, 0  ;;  %v1589_v17 = vrot.slane %v1583_v12, 1 }
 0xb81   :  { %v1454_v49 = vadd.f32 %v1450_v47, %v1415_v45  ;;  %v1591_v22 = vperm.slane %v1589_v17, 0 }
 0xb82   :  { %v1486_v43 = vpop.f32.mrf.mxu2 }
 0xb83   :  { %v1492_v15 = vadd.f32 %v1486_v43, %v1453_v41 }
 0xb85   :  { %v1498_v19 = vadd.f32 %v1796_v42, %v1492_v15 }
 0xb87   :  { %v1502_v46 = vmul.f32 0.044715, %v1498_v19  ;;  %v1500_v62 = vmul.f32 0.5, %v1498_v19 }
 0xb89   :  { %v1504_v48 = vmul.f32 %v1502_v46, %v1498_v19 }
 0xb8a   :  { %v1489_v50 = vpop.f32.mrf.mxu2 }
 0xb8b   :  { %v1493_v51 = vadd.f32 %v1489_v50, %v1454_v49  ;;  %v1506_v52 = vmul.f32 %v1504_v48, %v1498_v19 }
 0xb8d   :  { %v1499_v53 = vadd.f32 %v1796_v42, %v1493_v51  ;;  %v1508_v9 = vadd.f32 %v1506_v52, %v1498_v19 }
 0xb8f   :  { %v1510_v54 = vmul.f32 0.7978846, %v1508_v9  ;;  %v1503_v55 = vmul.f32 0.044715, %v1499_v53  ;;  %v1501_v8 = vmul.f32 0.5, %v1499_v53 }
 0xb91   :  { %1839 = vtanh.f32 %v1510_v54  ;;  %v1505_v10 = vmul.f32 %v1503_v55, %v1499_v53 }
 0xb93   :  { %v1507_v56 = vmul.f32 %v1505_v10, %v1499_v53 }
 0xb95   :  { %v1509_v57 = vadd.f32 %v1507_v56, %v1499_v53 }
 0xb97   :  { %v1840_v58 = vpop.eup %1839  ;;  %v1511_v60 = vmul.f32 0.7978846, %v1509_v57 }
 0xb98   :  { %v1514_v1 = vadd.f32 1.0, %v1840_v58 }
 0xb99   :  { %1841 = vtanh.f32 %v1511_v60 }
 0xb9a   :  { %v1516_v3 = vmul.f32 %v1514_v1, %v1500_v62 }
 0xb9c   :  { %1550 = vmatmul.f32.vlgmr.msra.gmra.mxu3 %v1516_v3 }
 0xb9f   :  { %v1842_v5 = vpop.eup %1841 }
 0xba0   :  { %v1515_v0 = vadd.f32 1.0, %v1842_v5 }
 0xba2   :  { %v1517_v11 = vmul.f32 %v1515_v0, %v1501_v8 }
 0xba4   :  { %1553 = vmatmul.f32.gmra.mxu3 %v1517_v11 }
 0xc1f   :  { %v1551_v14 = vpop.f32.mrf.mxu3 }
 0xc20   :  { %v1586_v16 = vadd.f32 %v1551_v14, %v2269_v61 }
 0xc22   :  { %v1594_v18 = vadd.f32 %v1590_v2, %v1586_v16 }
 0xc24   :  { %v1596_v21 = vmul.f32 %v1594_v18, %v2265_v59 }
 0xc26   :  { %1598 = vst.msk [vmem:[#allocation3] sm:$0xff] %vm46_vm0, %v1596_v21 }
 0xc27   :  { %v1554_v23 = vpop.f32.mrf.mxu3 }
 0xc28   :  { %v1587_v24 = vadd.f32 %v1554_v23, %v2277_v7 }
 0xc2a   :  { %v1595_v25 = vadd.f32 %v1591_v22, %v1587_v24 }
 0xc2c   :  { %v1597_v61 = vmul.f32 %v1595_v25, %v2273_v4 }
 0xc2e   :  { %1599 = vst.msk [vmem:[#allocation3 + $0x8] sm:$0xff] %vm46_vm0, %v1597_v61 }
 0xc2f   :  { %1612 = dma.vmem_to_hbm [thread:$0]  %s1605_s9, 256, %s1607_s16, [#allocation4], %s1874_s17, %s1874_s17, %s1875_s18  }
 0xc30   :  { %1867 = dma.done.wait [#allocation4], 256  }
 0xc31   :  { %1868 = vsyncadd [#allocation4], 4294967040 }
 0xc32   :  { %1617 = vsyncpa [#allocation4], 1 }

</bundles_post_ra>
